<compile_context>
chip_gen: v7x
topology: tpu7x:2x2x1
jax: 0.10.0
libtpu: 0.0.40
codegen_flags: <defaults>
</compile_context>

<pallas_src>
import math

import jax
import jax.numpy as jnp
from jax.experimental import pallas as pl
from jax.experimental.pallas import tpu as pltpu


_TILE_M = 8      # batch rows per grid step (f32 sublane multiple)
_LANE = 128      # lane width; out-feature tiles are multiples of this


def _round_up(v, mult):
    return ((v + mult - 1) // mult) * mult


def _r_chunk(rp):
    """Sublane-aligned r-chunk so the statically unrolled loop has <= ~16 steps."""
    rc = -(-rp // 16)            # ceil(rp / 16)
    rc = _round_up(rc, 8)
    return max(8, min(rc, rp))


def _vmem_limit_bytes():
    """Per-generation scoped-VMEM limit (v7x has 64 MiB/TC, v5e/v6e 128 MiB)."""
    try:
        cap = int(pltpu.get_tpu_info().vmem_capacity_bytes)
    except Exception:
        cap = 64 * 1024 * 1024   # conservative (v7x-sized) fallback
    return max(32 * 1024 * 1024, min(int(cap * 0.7), 112 * 1024 * 1024))


def _pick_tile_c(rp, cp, vmem_limit):
    """Largest lane-multiple out-feature tile whose double-buffered working set fits."""
    budget = vmem_limit // 3     # headroom for compiler scratch / regalloc
    for cand in (1024, 512, 256, 128):
        if cp % cand:
            continue
        e_blk = _TILE_M * rp * cand * 4
        mu_blk = rp * cand * 4
        small = (_TILE_M * rp + _TILE_M * cand + cand + rp) * 4
        chunk_tmp = _TILE_M * _r_chunk(rp) * cand * 4
        if 2 * (e_blk + mu_blk + small) + chunk_tmp <= budget:
            return cand
    return _LANE


def _vmg_kernel(x_ref, mu_ref, lvr_ref, lvc_ref, e_ref, h_ref):
    # x_ref:  (TM, Rp)      zero-padded augmented input (bias column of ones)
    # mu_ref: (Rp, TC)      mean-weight tile
    # lvr_ref:(1, Rp)       logvar_in (padded)
    # lvc_ref:(1, TC)       logvar_out tile (padded)
    # e_ref:  (TM, Rp, TC)  standard-normal noise tile
    # h_ref:  (TM, TC)      output tile
    tm, rp = x_ref.shape
    tc = h_ref.shape[1]

    x = x_ref[...]
    sr = jnp.sqrt(jnp.exp(lvr_ref[...]))          # (1, Rp)   EUP
    sc = jnp.sqrt(jnp.exp(lvc_ref[...]))          # (1, TC)   EUP
    y = x * sr                                    # (TM, Rp)

    # Mean term on the MXU (weight shared across the batch).
    h_mean = jnp.dot(x, mu_ref[...], preferred_element_type=jnp.float32)   # (TM, TC)

    # Noise term: noise[b, c] = sum_r y[b, r] * E[b, r, c].
    # Accumulated over r in sublane-aligned chunks so the broadcast temporary
    # is (TM, chunk, TC) instead of (TM, Rp, TC).
    rc = _r_chunk(rp)
    noise = jnp.zeros((tm, tc), jnp.float32)
    for s in range(0, rp, rc):                    # static unroll (<= ~16 chunks)
        n = min(rc, rp - s)
        yk = y[:, s:s + n][:, :, None]            # (TM, n, 1)
        ek = e_ref[:, s:s + n, :]                 # (TM, n, TC) — static VMEM view
        noise = noise + jnp.sum(yk * ek, axis=1)  # (TM, TC)

    h_ref[...] = (h_mean + noise * sc).astype(h_ref.dtype)


def vmg_linear(x, mu, logvar_in, logvar_out, noise_key):
    """Pallas forward of VMGLinear. Returns (h, D_KL)."""
    m, in_dim = x.shape
    r, c = mu.shape
    assert r == in_dim + 1, "mu must have shape (in_dim + 1, out_dim)"

    # Noise drawn in the wrapper (identical stream to the pure-JAX reference).
    e = jax.random.normal(noise_key, (m, r, c), dtype=jnp.float32)

    # Pad to TPU-friendly shapes: r -> multiple of 8 (sublane), c -> multiple of
    # 128 (lane), m -> multiple of the batch tile.  Padded rows/cols of x_aug
    # are zero, so padded entries of mu / E / logvar cannot leak into real
    # outputs; padded output columns are sliced off below.
    tm = _TILE_M
    mp = _round_up(max(m, tm), tm)
    rp = _round_up(r, 8)
    cp = _round_up(c, _LANE)

    x_aug = (jnp.zeros((mp, rp), jnp.float32)
             .at[:m, :in_dim].set(x.astype(jnp.float32))
             .at[:m, in_dim].set(1.0))
    mu_p = jnp.pad(mu.astype(jnp.float32), ((0, rp - r), (0, cp - c)))
    lvr_p = jnp.pad(logvar_in.astype(jnp.float32).reshape(1, r), ((0, 0), (0, rp - r)))
    lvc_p = jnp.pad(logvar_out.astype(jnp.float32).reshape(1, c), ((0, 0), (0, cp - c)))
    e_p = jnp.pad(e, ((0, mp - m), (0, rp - r), (0, cp - c)))

    vmem_limit = _vmem_limit_bytes()
    tc = _pick_tile_c(rp, cp, vmem_limit)
    grid = (mp // tm, cp // tc)

    cost = pl.CostEstimate(
        flops=4 * mp * rp * cp,                         # mean matmul + noise contraction
        transcendentals=2 * (rp + tc) * grid[0] * grid[1],
        bytes_accessed=4 * (mp * rp * cp                # E (dominant stream)
                            + mp * rp                   # x_aug
                            + rp * cp * grid[0]         # mu re-read per batch tile
                            + mp * cp),                 # h
    )

    h_p = pl.pallas_call(
        _vmg_kernel,
        out_shape=jax.ShapeDtypeStruct((mp, cp), jnp.float32),
        grid=grid,
        in_specs=[
            pl.BlockSpec((tm, rp), lambda i, j: (i, 0)),       # x_aug
            pl.BlockSpec((rp, tc), lambda i, j: (0, j)),       # mu
            pl.BlockSpec((1, rp), lambda i, j: (0, 0)),        # logvar_in
            pl.BlockSpec((1, tc), lambda i, j: (0, j)),        # logvar_out
            pl.BlockSpec((tm, rp, tc), lambda i, j: (i, 0, j)),  # E
        ],
        out_specs=pl.BlockSpec((tm, tc), lambda i, j: (i, j)),
        compiler_params=pltpu.CompilerParams(
            dimension_semantics=("parallel", "parallel"),
            vmem_limit_bytes=vmem_limit,
        ),
        cost_estimate=cost,
    )(x_aug, mu_p, lvr_p, lvc_p, e_p)

    h = h_p[:m, :c]

    # D_KL touches only the (small) parameters — computed outside the hot kernel.
    var_r = jnp.exp(logvar_in)
    var_c = jnp.exp(logvar_out)
    dkl = 0.5 * (jnp.sum(var_r) * jnp.sum(var_c) + jnp.sum(mu ** 2)
                 - float(r * c)
                 - float(c) * jnp.sum(logvar_in)
                 - float(r) * jnp.sum(logvar_out))
    return h, dkl


def _reference(x, mu, logvar_in, logvar_out, noise_key):
    """Pure-JAX reference mirroring the PyTorch forward."""
    m = x.shape[0]
    r, c = mu.shape
    var_r = jnp.exp(logvar_in)
    var_c = jnp.exp(logvar_out)
    E = jax.random.normal(noise_key, (m, r, c), dtype=jnp.float32)
    W = mu[None] + jnp.sqrt(var_r)[None, :, None] * E * jnp.sqrt(var_c)[None, None, :]
    x_aug = jnp.concatenate([x, jnp.ones((m, 1), dtype=x.dtype)], axis=1)
    h = jnp.einsum('br,brc->bc', x_aug, W)
    dkl = 0.5 * (jnp.sum(var_r) * jnp.sum(var_c) + jnp.sum(mu ** 2)
                 - r * c - c * jnp.sum(logvar_in) - r * jnp.sum(logvar_out))
    return h, dkl


if __name__ == "__main__":
    # Small but non-trivial shapes: exercises a multi-step (batch x out) grid
    # with r = in_dim + 1 padding (41 -> 48) and c tiling (384 = 3 x 128).
    batch, in_dim, out_dim = 20, 40, 384
    r, c = in_dim + 1, out_dim

    key = jax.random.PRNGKey(0)
    k_x, k_mu, k_lvr, k_lvc, k_noise = jax.random.split(key, 5)

    x = jax.random.normal(k_x, (batch, in_dim), dtype=jnp.float32)
    # Deterministic parameter init matching the PyTorch shapes:
    #   mu ~ kaiming_normal on (r, c)  (fan_in = c, gain = sqrt(2))
    mu = jax.random.normal(k_mu, (r, c), dtype=jnp.float32) * math.sqrt(2.0 / c)
    logvar_in = -3.0 + 1e-6 * jax.random.normal(k_lvr, (r,), dtype=jnp.float32)
    logvar_out = -3.0 + 1e-6 * jax.random.normal(k_lvc, (c,), dtype=jnp.float32)

    h, dkl = vmg_linear(x, mu, logvar_in, logvar_out, k_noise)
    jax.block_until_ready((h, dkl))

    h_ref, dkl_ref = _reference(x, mu, logvar_in, logvar_out, k_noise)
    assert h.shape == (batch, out_dim)
    assert jnp.allclose(h, h_ref, atol=1e-3, rtol=1e-3), \
        float(jnp.max(jnp.abs(h - h_ref)))
    assert jnp.allclose(dkl, dkl_ref, atol=1e-3, rtol=1e-4)

    print("KERNEL_OK")
</pallas_src>

<mosaic_0001>
module attributes {stable_mosaic.version = 11 : i64} {
  func.func @_vmg_kernel(%arg0: i32, %arg1: i32, %arg2: memref<8x48xf32, #tpu.memory_space<vmem>>, %arg3: memref<48x128xf32, #tpu.memory_space<vmem>>, %arg4: memref<1x48xf32, #tpu.memory_space<vmem>>, %arg5: memref<1x128xf32, #tpu.memory_space<vmem>>, %arg6: memref<8x48x128xf32, #tpu.memory_space<vmem>>, %arg7: memref<8x128xf32, #tpu.memory_space<vmem>>) attributes {dimension_semantics = [#tpu.dimension_semantics<parallel>, #tpu.dimension_semantics<parallel>], iteration_bounds = array<i64: 3, 3>, scalar_prefetch = 0 : i64, scratch_operands = 0 : i64, tpu.core_type = #tpu.core_type<tc>, window_params = [{transform_indices = @transform_0, window_bounds = array<i64: 8, 48>}, {transform_indices = @transform_1, window_bounds = array<i64: 48, 128>}, {pipeline_mode = #tpu.pipeline_mode<synchronous>, transform_indices = @transform_2, window_bounds = array<i64: 1, 48>}, {transform_indices = @transform_3, window_bounds = array<i64: 1, 128>}, {transform_indices = @transform_4, window_bounds = array<i64: 8, 48, 128>}, {transform_indices = @transform_5, window_bounds = array<i64: 8, 128>}]} {
    %c0 = arith.constant 0 : index
    %c0_0 = arith.constant 0 : index
    %0 = vector.load %arg2[%c0, %c0_0] : memref<8x48xf32, #tpu.memory_space<vmem>>, vector<8x48xf32>
    %c0_1 = arith.constant 0 : index
    %c0_2 = arith.constant 0 : index
    %1 = vector.load %arg4[%c0_1, %c0_2] : memref<1x48xf32, #tpu.memory_space<vmem>>, vector<1x48xf32>
    %2 = math.exp %1 : vector<1x48xf32>
    %3 = math.sqrt %2 : vector<1x48xf32>
    %c0_3 = arith.constant 0 : index
    %c0_4 = arith.constant 0 : index
    %4 = vector.load %arg5[%c0_3, %c0_4] : memref<1x128xf32, #tpu.memory_space<vmem>>, vector<1x128xf32>
    %5 = math.exp %4 : vector<1x128xf32>
    %6 = math.sqrt %5 : vector<1x128xf32>
    %7 = vector.broadcast %3 : vector<1x48xf32> to vector<8x48xf32>
    %8 = arith.mulf %0, %7 : vector<8x48xf32>
    %c0_5 = arith.constant 0 : index
    %c0_6 = arith.constant 0 : index
    %9 = vector.load %arg3[%c0_5, %c0_6] : memref<48x128xf32, #tpu.memory_space<vmem>>, vector<48x128xf32>
    %cst = arith.constant dense<0.000000e+00> : vector<8x128xf32>
    %10 = tpu.matmul %0, %9, %cst {dimension_numbers = #tpu.dot_dimension_numbers<[1], [0], [0], [1], [0, 0, 1, 1], [], []>} : vector<8x48xf32>, vector<48x128xf32>, vector<8x128xf32> -> vector<8x128xf32>
    %cst_7 = arith.constant 0.000000e+00 : f32
    %11 = vector.broadcast %cst_7 : f32 to vector<8x128xf32>
    %12 = vector.extract_strided_slice %8 {offsets = [0, 0], sizes = [8, 8], strides = [1, 1]} : vector<8x48xf32> to vector<8x8xf32>
    %13 = vector.shape_cast %12 : vector<8x8xf32> to vector<8x8x1xf32>
    %c0_8 = arith.constant 0 : index
    %c0_9 = arith.constant 0 : index
    %c0_10 = arith.constant 0 : index
    %14 = vector.load %arg6[%c0_8, %c0_9, %c0_10] : memref<8x48x128xf32, #tpu.memory_space<vmem>>, vector<8x8x128xf32>
    %15 = vector.broadcast %13 : vector<8x8x1xf32> to vector<8x8x128xf32>
    %16 = arith.mulf %15, %14 : vector<8x8x128xf32>
    %cst_11 = arith.constant dense<0.000000e+00> : vector<8x128xf32>
    %17 = vector.multi_reduction <add>, %16, %cst_11 [1] : vector<8x8x128xf32> to vector<8x128xf32>
    %18 = arith.addf %11, %17 : vector<8x128xf32>
    %19 = vector.extract_strided_slice %8 {offsets = [0, 8], sizes = [8, 8], strides = [1, 1]} : vector<8x48xf32> to vector<8x8xf32>
    %20 = vector.shape_cast %19 : vector<8x8xf32> to vector<8x8x1xf32>
    %c0_12 = arith.constant 0 : index
    %c8 = arith.constant 8 : index
    %c0_13 = arith.constant 0 : index
    %21 = vector.load %arg6[%c0_12, %c8, %c0_13] : memref<8x48x128xf32, #tpu.memory_space<vmem>>, vector<8x8x128xf32>
    %22 = vector.broadcast %20 : vector<8x8x1xf32> to vector<8x8x128xf32>
    %23 = arith.mulf %22, %21 : vector<8x8x128xf32>
    %cst_14 = arith.constant dense<0.000000e+00> : vector<8x128xf32>
    %24 = vector.multi_reduction <add>, %23, %cst_14 [1] : vector<8x8x128xf32> to vector<8x128xf32>
    %25 = arith.addf %18, %24 : vector<8x128xf32>
    %26 = vector.extract_strided_slice %8 {offsets = [0, 16], sizes = [8, 8], strides = [1, 1]} : vector<8x48xf32> to vector<8x8xf32>
    %27 = vector.shape_cast %26 : vector<8x8xf32> to vector<8x8x1xf32>
    %c0_15 = arith.constant 0 : index
    %c16 = arith.constant 16 : index
    %c0_16 = arith.constant 0 : index
    %28 = vector.load %arg6[%c0_15, %c16, %c0_16] : memref<8x48x128xf32, #tpu.memory_space<vmem>>, vector<8x8x128xf32>
    %29 = vector.broadcast %27 : vector<8x8x1xf32> to vector<8x8x128xf32>
    %30 = arith.mulf %29, %28 : vector<8x8x128xf32>
    %cst_17 = arith.constant dense<0.000000e+00> : vector<8x128xf32>
    %31 = vector.multi_reduction <add>, %30, %cst_17 [1] : vector<8x8x128xf32> to vector<8x128xf32>
    %32 = arith.addf %25, %31 : vector<8x128xf32>
    %33 = vector.extract_strided_slice %8 {offsets = [0, 24], sizes = [8, 8], strides = [1, 1]} : vector<8x48xf32> to vector<8x8xf32>
    %34 = vector.shape_cast %33 : vector<8x8xf32> to vector<8x8x1xf32>
    %c0_18 = arith.constant 0 : index
    %c24 = arith.constant 24 : index
    %c0_19 = arith.constant 0 : index
    %35 = vector.load %arg6[%c0_18, %c24, %c0_19] : memref<8x48x128xf32, #tpu.memory_space<vmem>>, vector<8x8x128xf32>
    %36 = vector.broadcast %34 : vector<8x8x1xf32> to vector<8x8x128xf32>
    %37 = arith.mulf %36, %35 : vector<8x8x128xf32>
    %cst_20 = arith.constant dense<0.000000e+00> : vector<8x128xf32>
    %38 = vector.multi_reduction <add>, %37, %cst_20 [1] : vector<8x8x128xf32> to vector<8x128xf32>
    %39 = arith.addf %32, %38 : vector<8x128xf32>
    %40 = vector.extract_strided_slice %8 {offsets = [0, 32], sizes = [8, 8], strides = [1, 1]} : vector<8x48xf32> to vector<8x8xf32>
    %41 = vector.shape_cast %40 : vector<8x8xf32> to vector<8x8x1xf32>
    %c0_21 = arith.constant 0 : index
    %c32 = arith.constant 32 : index
    %c0_22 = arith.constant 0 : index
    %42 = vector.load %arg6[%c0_21, %c32, %c0_22] : memref<8x48x128xf32, #tpu.memory_space<vmem>>, vector<8x8x128xf32>
    %43 = vector.broadcast %41 : vector<8x8x1xf32> to vector<8x8x128xf32>
    %44 = arith.mulf %43, %42 : vector<8x8x128xf32>
    %cst_23 = arith.constant dense<0.000000e+00> : vector<8x128xf32>
    %45 = vector.multi_reduction <add>, %44, %cst_23 [1] : vector<8x8x128xf32> to vector<8x128xf32>
    %46 = arith.addf %39, %45 : vector<8x128xf32>
    %47 = vector.extract_strided_slice %8 {offsets = [0, 40], sizes = [8, 8], strides = [1, 1]} : vector<8x48xf32> to vector<8x8xf32>
    %48 = vector.shape_cast %47 : vector<8x8xf32> to vector<8x8x1xf32>
    %c0_24 = arith.constant 0 : index
    %c40 = arith.constant 40 : index
    %c0_25 = arith.constant 0 : index
    %49 = vector.load %arg6[%c0_24, %c40, %c0_25] : memref<8x48x128xf32, #tpu.memory_space<vmem>>, vector<8x8x128xf32>
    %50 = vector.broadcast %48 : vector<8x8x1xf32> to vector<8x8x128xf32>
    %51 = arith.mulf %50, %49 : vector<8x8x128xf32>
    %cst_26 = arith.constant dense<0.000000e+00> : vector<8x128xf32>
    %52 = vector.multi_reduction <add>, %51, %cst_26 [1] : vector<8x8x128xf32> to vector<8x128xf32>
    %53 = arith.addf %46, %52 : vector<8x128xf32>
    %54 = vector.broadcast %6 : vector<1x128xf32> to vector<8x128xf32>
    %55 = arith.mulf %53, %54 : vector<8x128xf32>
    %56 = arith.addf %10, %55 : vector<8x128xf32>
    %c0_27 = arith.constant 0 : index
    %c0_28 = arith.constant 0 : index
    %57 = vector.load %arg7[%c0_27, %c0_28] : memref<8x128xf32, #tpu.memory_space<vmem>>, vector<8x128xf32>
    tpu.vector_store %arg7[%c0_27, %c0_28], %56 {strides = array<i32>} : memref<8x128xf32, #tpu.memory_space<vmem>>, vector<8x128xf32>,
    return
  }
  func.func @transform_0(%arg0: i32, %arg1: i32) -> (i32, i32) {
    %c0_i32 = arith.constant 0 : i32
    %c0_i32_0 = arith.constant 0 : i32
    return %arg0, %c0_i32 : i32, i32
  }
  func.func @transform_1(%arg0: i32, %arg1: i32) -> (i32, i32) {
    %c0_i32 = arith.constant 0 : i32
    %c0_i32_0 = arith.constant 0 : i32
    return %c0_i32, %arg1 : i32, i32
  }
  func.func @transform_2(%arg0: i32, %arg1: i32) -> (i32, i32) {
    %c0_i32 = arith.constant 0 : i32
    %c0_i32_0 = arith.constant 0 : i32
    %c0_i32_1 = arith.constant 0 : i32
    return %c0_i32, %c0_i32_0 : i32, i32
  }
  func.func @transform_3(%arg0: i32, %arg1: i32) -> (i32, i32) {
    %c0_i32 = arith.constant 0 : i32
    %c0_i32_0 = arith.constant 0 : i32
    return %c0_i32, %arg1 : i32, i32
  }
  func.func @transform_4(%arg0: i32, %arg1: i32) -> (i32, i32, i32) {
    %c0_i32 = arith.constant 0 : i32
    %c0_i32_0 = arith.constant 0 : i32
    return %arg0, %c0_i32, %arg1 : i32, i32, i32
  }
  func.func @transform_5(%arg0: i32, %arg1: i32) -> (i32, i32) {
    %c0_i32 = arith.constant 0 : i32
    return %arg0, %arg1 : i32, i32
  }
}

</mosaic_0001>

<bundles_post_ra>
// kernel: tpu_custom_call.1
= control target key start
LH: loop header
LB: loop body
LE: loop exit
PB: predicated region body
PF: predicated region fallthrough
CT: control target
= control target key end

     0   :  { %s2597_s0 = inlined_call_operand.hbm [shape: f32[24,48], index: 0, kind: input, shape index: {}]   ;;  %s2598_s1 = inlined_call_operand.hbm [shape: f32[48,384], index: 1, kind: input, shape index: {}]   ;;  %s2599_s2 = inlined_call_operand.hbm [shape: f32[1,48], index: 2, kind: input, shape index: {}]   ;;  %s2600_s3 = inlined_call_operand.hbm [shape: f32[1,384], index: 3, kind: input, shape index: {}]   ;;  %s2601_s4 = inlined_call_operand.hbm [shape: f32[24,48,384], index: 4, kind: input, shape index: {}]   ;;  %s2602_s5 = inlined_call_operand.hbm [shape: f32[24,384], index: 5, kind: output, shape index: {}]  }
   0x1   :  { %2631 = sst [smem:[#allocation32_spill]] %s2597_s0 }
   0x2   :  { %2632 = sst [smem:[#allocation33_spill]] %s2599_s2 }
   0x3   :  { %2633 = sst [smem:[#allocation34_spill]] %s2600_s3 }
   0x4   :  { %2634 = sst [smem:[#allocation35_spill]] %s2602_s5 }
   0x5   :  { %10 = vsyncpa [#allocation3], 0 }
   0x6   :  { %12 = vsyncpa [#allocation3 + $0x1], 0 }
   0x7   :  { %13 = vsyncpa [#allocation6], 0 }
   0x8   :  { %15 = vsyncpa [#allocation6 + $0x1], 0 }
   0x9   :  { %16 = vsyncpa [#allocation9], 0 }
   0xa   :  { %18 = vsyncpa [#allocation9 + $0x1], 0 }
   0xb   :  { %19 = vsyncpa [#allocation4], 0 }
   0xc   :  { %21 = vsyncpa [#allocation4 + $0x1], 0  ;;  %s1933_s18 = smov 0   ;;  %s1935_s19 = smov 0  }
   0xd   :  { %s1937_s20 = smov 0   ;;  %s1939_s21 = smov 0  }
   0xe   :  { %s1941_s22 = smov 0   ;;  %s1943_s23 = smov 0  }
   0xf   :  { %s1945_s24 = smov 0   ;;  %s1947_s25 = smov 0  }
  0x10   :  { %s1949_s26 = smov 0   ;;  %s1951_s27 = smov 0  }
  0x11   :  { %s1953_s28 = smov 0   ;;  %s1955_s29 = smov 0  }
  0x12   :  { %s1957_s30 = smov 0   ;;  %s1959_s6 = smov 0  }
  0x13 LB: > { %2635 = sst [smem:[#allocation18_spill]] %s1837_s18  ;;  %s2004_s7 = sadd.s32 4294967295, %s1889_s6   ;;  %s1889_s6 = sphi %s1959_s6, %s27_s6   ;;  %s1885_s30 = sphi %s1957_s30, %s2710_s30   ;;  %s1881_s29 = sphi %s1955_s29, %s2709_s29   ;;  %s1877_s28 = sphi %s1953_s28, %s2708_s28   ;;  %s1873_s27 = sphi %s1951_s27, %s2707_s27   ;;  %s1869_s26 = sphi %s1949_s26, %s2706_s26   ;;  %s1865_s25 = sphi %s1947_s25, %s2705_s25   ;;  %s1861_s24 = sphi %s1945_s24, %s2704_s24   ;;  %s1857_s23 = sphi %s1943_s23, %s2699_s23   ;;  %s1853_s22 = sphi %s1941_s22, %s2698_s22   ;;  %s1849_s21 = sphi %s1939_s21, %s2697_s21   ;;  %s1845_s20 = sphi %s1937_s20, %s2703_s20   ;;  %s1841_s19 = sphi %s1935_s19, %s2702_s19   ;;  %s1837_s18 = sphi %s1933_s18, %s2696_s18  }
  0x14   : > { %2636 = sst [smem:[#allocation19_spill]] %s1841_s19  ;;  %s1356_s8 = sadd.s32 4294967294, %s1889_s6  }
  0x15   : > { %2637 = sst [smem:[#allocation20_spill]] %s1853_s22  ;;  %p2608_p0 = scmp.eq.s32.totalorder %s2004_s7, 0 }
  0x16   : > { %2638 = sst [smem:[#allocation21_spill]] %s1857_s23  ;;  %p2609_p1 = scmp.ne.s32.totalorder %s1845_s20, %s1841_s19 }
  0x17   : > { %2639 = sst [smem:[#allocation22_spill]] %s1873_s27  ;;  %p160_p2 = scmp.ne.s32.totalorder %s1841_s19, %s1837_s18 }
  0x18   : > { %2640 = sst [smem:[#allocation23_spill]] %s1877_s28  ;;  %p186_p3 = scmp.eq.s32.totalorder %s2004_s7, 8 }
  0x19   : > { %2641 = sst [smem:[#allocation24_spill]] %s2004_s7  ;;  %p192_p4 = scmp.eq.s32.totalorder %s1356_s8, 8 }
  0x1a   : > { %p1357_p5 = scmp.ge.s32.totalorder %s1889_s6, 1  ;;  %p2016_p6 = por %p160_p2, %p2608_p0 }
  0x1b   : > { %p2023_p7 = por %p186_p3, %p2609_p1  ;;  %p2027_p8 = por %p192_p4, %p160_p2 }
  0x1c   : > { %s2642_s9 = scalar_select %p2016_p6, 1, 0 }
  0x1d   : > { %s2644_s10 = scalar_select %p2023_p7, 1, 0 }
  0x1e   : > { %2643 = sst [smem:[#allocation25_spill]] %s2642_s9  ;;  %p199_p9 = scmp.lt.s32.totalorder %s1889_s6, 10 }
  0x1f   : > { %2645 = sst [smem:[#allocation26_spill]] %s2644_s10  ;;  %s1891_s13 = smov [#allocation7]  }
  0x20   : > { %s2646_s11 = scalar_select %p2027_p8, 1, 0 }
  0x21   : > { %p2032_p10 = pnand %p1357_p5, %p199_p9  ;;  %s212_s14 = sshll.u32 %s1891_s13, 4  ;;  %s213_s14 = int_to_ptr.vmem [resolvable:$true] %s212_s14 }
  0x22   : > { %2647 = sst [smem:[#allocation27_spill]] %s2646_s11  ;;  %s2650_s2 = sld [smem:[#allocation33_spill]] }
  0x23   : > { %s2648_s12 = scalar_select %p2032_p10, 1, 0 }
  0x24   : > { %p1427_p11 = pneg %p2032_p10 }
  0x26   : > { %p2040_p12 = pnand %p1427_p11, %p2608_p0 }
  0x28   : > { %s1579_s8 = scalar_lea.hbm %s2650_s2, 16  ;;  %p1581_p2 = pneg %p2040_p12 }
  0x29   : > { %p1580_p13 = scmp.ne.s32.totalorder %s2650_s2, %s1579_s8  ;;  %p1586_p5 = scmp.lt.u32.totalorder %s1579_s8, %s2650_s2 }
  0x2b   : > { %p1582_p3 = pnand %p1581_p2, %p1580_p13 }
  0x2d   : > { %p1583_p4 = pneg %p1582_p3 }
  0x2f   : > { %p1588_p9 = pnand %p1586_p5, %p1583_p4 }
  0x31   : > { %1591 = shalt.err (!%p1588_p9)
}
  0x32   : > { %s1592_s10 = scalar_lea.vmem %s213_s14, 16  ;;  %s1599_s16 = scalar_lea.vmem %s213_s14, 32 }
  0x33   : > { %p1593_p11 = scmp.ne.s32.totalorder %s213_s14, %s1592_s10  ;;  %p1600_p8 = scmp.lt.s32.totalorder %s213_s14, %s213_s14 }
  0x34   : > { %p1601_p7 = scmp.lt.s32.totalorder %s1599_s16, %s1592_s10 }
  0x35   : > { %p1595_p0 = pnand %p1593_p11, %p1581_p2 }
  0x36   : > { %p1602_p6 = por %p1601_p7, %p1600_p8 }
  0x37   : > { %p1596_p1 = pneg %p1595_p0 }
  0x39   : > { %p1603_p10 = pnand %p1602_p6, %p1596_p1 }
  0x3b   : > { %1606 = shalt.err (!%p1603_p10)
}
  0x3c   : > { %1430 = dma.hbm_to_vmem [thread:$0]  (!%p2040_p12), %s2650_s2, 16, %s213_s14, [#allocation6]  }
  0x3d   : > { %s36_s5 = sadd.s32 1, %s1881_s29  ;;  %p2618_p1 = scmp.eq.s32.totalorder %s1889_s6, 0 }
  0x3e   : > { %p2061_p0 = scmp.ge.s32.totalorder %s36_s5, 3  ;;  %s72_s15 = sadd.s32 1, %s1857_s23 }
  0x3f   : > { %p79_p6 = scmp.ne.s32.totalorder %s1857_s23, %s1853_s22  ;;  %p85_p8 = scmp.ne.s32.totalorder %s1853_s22, %s1849_s21 }
  0x40   : > { %s2712_s5 = smov (%p2061_p0, %s36_s5), 0  ;;  %p2653_p10 = scmp.ne.s32.totalorder %s1845_s20, %s1841_s19 }
  0x41   : > { %2652 = sst [smem:[#allocation28_spill]] %s2712_s5  ;;  %p81_p7 = por %p79_p6, %p2618_p1 }
  0x42   : > { %s2079_s14 = ssub.s32 %s1881_s29, %s2712_s5  ;;  %p2086_p12 = por %p2653_p10, %p2618_p1 }
  0x43   : > { %p70_p13 = scmp.eq.s32.totalorder %s2079_s14, 0  ;;  %p2655_p2 = scmp.eq.s32.totalorder %s2004_s7, 0 }
  0x44   : > { %p2617_p4 = scmp.lt.s32.totalorder %s1889_s6, 9  ;;  %s243_s16 = sand.u32 1, %s1857_s23  }
  0x45   : > { %p2093_p3 = por %p85_p8, %p2655_p2  ;;  %s1407_s18 = smul.u32 48, %s243_s16 }
  0x46   : > { %s2100_s13 = scalar_select %p70_p13, %s1857_s23, %s72_s15  }
  0x47   : > { %s2656_s8 = scalar_select %p2093_p3, 1, 0 }
  0x48   : > { %2658 = sst [smem:[#allocation30_spill]] %s2100_s13  ;;  %p2105_p5 = pnand %p2617_p4, %p81_p7 }
  0x49   : > { %2657 = sst [smem:[#allocation29_spill]] %s2656_s8  ;;  %s245_s2 = scalar_lea.vmem [#allocation5], %s1407_s18 }
  0x4a   : > { %s251_s5 = sshll.u32 %s245_s2, 4  ;;  %s1363_s27 = sshll.u32 %s1881_s29, 4  ;;  %s2110_s5 = int_to_ptr.vmem [resolvable:$true] %s251_s5 }
  0x4b   : > { %s2660_s3 = sld [smem:[#allocation34_spill]]  ;;  %s264_s15 = scalar_lea.vmem [#allocation8], %s243_s16 }
  0x4c   : > { %s271_s13 = sshll.u32 %s264_s15, 4  ;;  %p2121_p9 = pnand %p2617_p4, %p2086_p12  ;;  %s2125_s13 = int_to_ptr.vmem [resolvable:$true] %s271_s13 }
  0x4d   : > { %s2662_s2 = sand.u32 1, %s1889_s6   ;;  %p2629_p6 = pneg %p2105_p5 }
  0x4e   : > { %s2661_s23 = scalar_select %p2121_p9, 1, 0 }
  0x4f   : > { %s2129_s18 = scalar_lea.sflag [#allocation9], %s2662_s2 }
  0x51   : > { %s2115_s21 = scalar_lea.hbm %s2660_s3, %s1363_s27  ;;  %s1612_s17 = scalar_lea.hbm %s2660_s3, 48 }
  0x52   : > { %s1607_s28 = scalar_lea.hbm %s2115_s21, 16  ;;  %p1613_p10 = scmp.lt.u32.totalorder %s2115_s21, %s2660_s3 }
  0x53   : > { %p1608_p11 = scmp.ne.s32.totalorder %s2115_s21, %s1607_s28  ;;  %p1614_p12 = scmp.lt.u32.totalorder %s1612_s17, %s1607_s28 }
  0x54   : > { %p1616_p2 = scmp.lt.u32.totalorder %s1607_s28, %s2115_s21 }
  0x55   : > { %p1610_p7 = pnand %p2629_p6, %p1608_p11  ;;  %p1615_p13 = por %p1614_p12, %p1613_p10 }
  0x57   : > { %p1611_p8 = pneg %p1610_p7  ;;  %p1617_p4 = por %p1616_p2, %p1615_p13 }
  0x59   : > { %p1618_p1 = pnand %p1617_p4, %p1611_p8 }
  0x5b   : > { %1621 = shalt.err (!%p1618_p1)
}
  0x5c   : > { %s1622_s2 = scalar_lea.vmem %s2125_s13, 16  ;;  %s1892_s27 = smov [#allocation8]  }
  0x5d   : > { %p1623_p11 = scmp.ne.s32.totalorder %s2125_s13, %s1622_s2  ;;  %s1627_s9 = sshll.u32 %s1892_s27, 4  ;;  %s1628_s9 = int_to_ptr.vmem [resolvable:$false] %s1627_s9 }
  0x5e   : > { %s1629_s16 = scalar_lea.vmem %s1628_s9, 32  ;;  %p1630_p9 = scmp.lt.s32.totalorder %s2125_s13, %s1628_s9 }
  0x5f   : > { %p1625_p7 = pnand %p1623_p11, %p2629_p6  ;;  %p1631_p10 = scmp.lt.s32.totalorder %s1629_s16, %s1622_s2 }
  0x61   : > { %p1626_p3 = pneg %p1625_p7  ;;  %p1632_p12 = por %p1631_p10, %p1630_p9 }
  0x63   : > { %p1633_p13 = pnand %p1632_p12, %p1626_p3 }
  0x65   : > { %1636 = shalt.err (!%p1633_p13)
}
  0x66   : > { %1440 = dma.hbm_to_vmem [thread:$0]  (!%p2105_p5), %s2115_s21, 16, %s2125_s13, %s2129_s18  }
  0x67   : > { %s39_s28 = sadd.s32 1, %s1885_s30  ;;  %s46_s17 = sadd.s32 1, %s1869_s26 }
  0x68   : > { %s2714_s28 = smov (!%p2061_p0, %s39_s28), %s1885_s30  ;;  %p53_p1 = scmp.ne.s32.totalorder %s1869_s26, %s1865_s25 }
  0x69   : > { %p59_p3 = scmp.ne.s32.totalorder %s1865_s25, %s1861_s24  ;;  %p41_p4 = scmp.ge.s32.totalorder %s2714_s28, 3 }
  0x6a   : > { %s147_s15 = sadd.s32 1, %s1845_s20  ;;  %p2663_p9 = scmp.eq.s32.totalorder %s1889_s6, 0 }
  0x6b   : > { %p2665_p2 = scmp.eq.s32.totalorder %s2004_s7, 0  ;;  %s2716_s28 = smov (%p41_p4, %s2714_s28), 0 }
  0x6c   : > { %p2169_p8 = por %p2663_p9, %p53_p1  ;;  %s223_s24 = sand.u32 1, %s1869_s26  }
  0x6d   : > { %p2175_p11 = por %p2665_p2, %p59_p3  ;;  %s1361_s10 = sshll.u32 %s1885_s30, 7 }
  0x6e   : > { %s43_s13 = ssub.s32 %s1885_s30, %s2716_s28  ;;  %s1360_s9 = sshll.u32 %s223_s24, 3 }
  0x6f   : > { %s2666_s21 = scalar_select %p2175_p11, 1, 0 }
  0x70   : > { %p44_p0 = scmp.eq.s32.totalorder %s43_s13, 0  ;;  %s144_s27 = sor.u32 %s2079_s14, %s43_s13 }
  0x71   : > { %2667 = sst [smem:[#allocation31_spill]] %s2666_s21  ;;  %p145_p7 = scmp.eq.s32.totalorder %s144_s27, 0 }
  0x72   : > { %s2187_s16 = scalar_select %p44_p0, %s1869_s26, %s46_s17  }
  0x73   : > { %s2190_s3 = scalar_select %p145_p7, %s1845_s20, %s147_s15  }
  0x74   : > { %s2668_s0 = sld [smem:[#allocation32_spill]]  ;;  %s227_s7 = scalar_lea.vmem [#allocation2], %s1360_s9 }
  0x75   : > { %s234_s21 = sshll.u32 %s227_s7, 4  ;;  %p2669_p10 = scmp.lt.s32.totalorder %s1889_s6, 9  ;;  %s2205_s21 = int_to_ptr.vmem [resolvable:$true] %s234_s21 }
  0x76   : > { %s1409_s17 = smul.u32 144, %s1885_s30  ;;  %s1362_s19 = sshll.u32 %s1881_s29, 7 }
  0x77   : > { %p2201_p12 = pnand %p2669_p10, %p2169_p8  ;;  %s224_s8 = scalar_lea.sflag [#allocation3], %s223_s24 }
  0x79   : > { %p1639_p1 = pneg %p2201_p12 }
  0x7a   : > { %s2195_s22 = scalar_lea.hbm %s2668_s0, %s1361_s10  ;;  %s1642_s10 = scalar_lea.hbm %s2668_s0, 384 }
  0x7b   : > { %s1637_s15 = scalar_lea.hbm %s2195_s22, 128  ;;  %p1643_p9 = scmp.lt.u32.totalorder %s2195_s22, %s2668_s0 }
  0x7c   : > { %p1638_p13 = scmp.ne.s32.totalorder %s2195_s22, %s1637_s15  ;;  %p1644_p8 = scmp.lt.u32.totalorder %s1642_s10, %s1637_s15 }
  0x7d   : > { %p1646_p0 = scmp.lt.u32.totalorder %s1637_s15, %s2195_s22 }
  0x7e   : > { %p1640_p3 = pnand %p1639_p1, %p1638_p13  ;;  %p1645_p2 = por %p1644_p8, %p1643_p9 }
  0x80   : > { %p1641_p4 = pneg %p1640_p3  ;;  %p1647_p7 = por %p1646_p0, %p1645_p2 }
  0x82   : > { %p1648_p10 = pnand %p1647_p7, %p1641_p4 }
  0x84   : > { %1651 = shalt.err (!%p1648_p10)
}
  0x85   : > { %s1652_s24 = scalar_lea.vmem %s2205_s21, 128  ;;  %s1893_s9 = smov [#allocation2]  }
  0x86   : > { %p1653_p13 = scmp.ne.s32.totalorder %s2205_s21, %s1652_s24  ;;  %s1657_s7 = sshll.u32 %s1893_s9, 4  ;;  %s1658_s7 = int_to_ptr.vmem [resolvable:$false] %s1657_s7 }
  0x87   : > { %s1659_s2 = scalar_lea.vmem %s1658_s7, 256  ;;  %p1660_p11 = scmp.lt.s32.totalorder %s2205_s21, %s1658_s7 }
  0x88   : > { %p1655_p3 = pnand %p1653_p13, %p1639_p1  ;;  %p1661_p9 = scmp.lt.s32.totalorder %s1659_s2, %s1652_s24 }
  0x8a   : > { %p1656_p6 = pneg %p1655_p3  ;;  %p1662_p8 = por %p1661_p9, %p1660_p11 }
  0x8c   : > { %p1663_p2 = pnand %p1662_p8, %p1656_p6 }
  0x8e   : > { %1666 = shalt.err (!%p1663_p2)
}
  0x8f   : > { %1434 = dma.hbm_to_vmem [thread:$0]  (!%p2201_p12), %s2195_s22, 128, %s2205_s21, %s224_s8  }
  0x90   : > { %s2239_s13 = scalar_lea.hbm %s2598_s1, %s1362_s19  ;;  %s2671_s27 = sand.u32 1, %s1889_s6  }
  0x91   : > { %s2243_s24 = scalar_lea.sflag [#allocation6], %s2671_s27  ;;  %s1667_s14 = scalar_lea.hbm %s2239_s13, 768 }
  0x92   : > { %p1668_p6 = scmp.ne.s32.totalorder %s2239_s13, %s1667_s14  ;;  %p2672_p11 = pneg %p2105_p5 }
  0x93   : > { %s1672_s8 = scalar_lea.hbm %s2598_s1, 2304  ;;  %p1673_p12 = scmp.lt.u32.totalorder %s2239_s13, %s2598_s1 }
  0x94   : > { %p1670_p1 = pnand %p1668_p6, %p2672_p11  ;;  %p1674_p0 = scmp.lt.u32.totalorder %s1672_s8, %s1667_s14 }
  0x95   : > { %p1676_p10 = scmp.lt.u32.totalorder %s1667_s14, %s2239_s13 }
  0x96   : > { %p1671_p4 = pneg %p1670_p1  ;;  %p1675_p7 = por %p1674_p0, %p1673_p12 }
  0x98   : > { %p1677_p13 = por %p1676_p10, %p1675_p7 }
  0x9a   : > { %p1678_p3 = pnand %p1677_p13, %p1671_p4 }
  0x9c   : > { %1681 = shalt.err (!%p1678_p3)
}
  0x9d   : > { %s1682_s7 = scalar_lea.vmem %s2110_s5, 768  ;;  %p2673_p8 = pmov %p2672_p11 }
  0x9e   : > { %p1683_p9 = scmp.ne.s32.totalorder %s2110_s5, %s1682_s7  ;;  %s1894_s2 = smov [#allocation5]  }
  0x9f   : > { %s1687_s15 = sshll.u32 %s1894_s2, 4  ;;  %s1688_s15 = int_to_ptr.vmem [resolvable:$false] %s1687_s15 }
  0xa0   : > { %p1685_p2 = pnand %p1683_p9, %p2673_p8  ;;  %s1689_s10 = scalar_lea.vmem %s1688_s15, 1536 }
  0xa1   : > { %p1690_p11 = scmp.lt.s32.totalorder %s2110_s5, %s1688_s15  ;;  %p1691_p1 = scmp.lt.s32.totalorder %s1689_s10, %s1682_s7 }
  0xa2   : > { %p1686_p6 = pneg %p1685_p2 }
  0xa3   : > { %p1692_p12 = por %p1691_p1, %p1690_p11 }
  0xa5   : > { %p1693_p0 = pnand %p1692_p12, %p1686_p6 }
  0xa7   : > { %1696 = shalt.err (!%p1693_p0)
}
  0xa8   : > { %s1895_s27 = smov 384   ;;  %s1896_s14 = smov 128  }
  0xa9   : > { %s1897_s22 = smov 8   ;;  %s280_s21 = sand.u32 1, %s1845_s20  }
  0xaa   : > { %1437 = dma.hbm_to_vmem [thread:$0]  (!%p2105_p5), %s2239_s13, 768, %s2110_s5, %s2243_s24, %s1895_s27, %s1896_s14, %s1897_s22  }
  0xab   : > { %s288_s8 = sadd.s32 %s1881_s29, %s1409_s17  ;;  %s1408_s9 = smul.u32 384, %s280_s21 }
  0xac   : > { %s1366_s19 = sshll.u32 %s288_s8, 7  ;;  %p2674_p4 = scmp.ne.s32.totalorder %s2661_s23, 0 }
  0xad   : > { %s2279_s15 = scalar_lea.hbm %s2601_s4, %s1366_s19  ;;  %s282_s10 = scalar_lea.vmem [#allocation10], %s1408_s9 }
  0xae   : > { %s291_s11 = sshll.u32 %s282_s10, 4  ;;  %s1697_s0 = scalar_lea.hbm %s2279_s15, 6144  ;;  %s2281_s11 = int_to_ptr.vmem [resolvable:$true] %s291_s11 }
  0xaf   : > { %p1698_p5 = scmp.ne.s32.totalorder %s2279_s15, %s1697_s0  ;;  %p1699_p7 = pneg %p2674_p4 }
  0xb0   : > { %s1702_s13 = scalar_lea.hbm %s2601_s4, 55296  ;;  %p1703_p3 = scmp.lt.u32.totalorder %s2279_s15, %s2601_s4 }
  0xb1   : > { %p1700_p10 = pnand %p1699_p7, %p1698_p5  ;;  %p1704_p9 = scmp.lt.u32.totalorder %s1702_s13, %s1697_s0 }
  0xb2   : > { %p1706_p2 = scmp.lt.u32.totalorder %s1697_s0, %s2279_s15 }
  0xb3   : > { %p1701_p13 = pneg %p1700_p10  ;;  %p1705_p8 = por %p1704_p9, %p1703_p3 }
  0xb5   : > { %p1707_p6 = por %p1706_p2, %p1705_p8 }
  0xb7   : > { %p1708_p11 = pnand %p1707_p6, %p1701_p13 }
  0xb9   : > { %1711 = shalt.err (!%p1708_p11)
}
  0xba   : > { %s1712_s8 = scalar_lea.vmem %s2281_s11, 6144  ;;  %s1898_s9 = smov [#allocation10]  }
  0xbb   : > { %p1713_p1 = scmp.ne.s32.totalorder %s2281_s11, %s1712_s8  ;;  %s1717_s19 = sshll.u32 %s1898_s9, 4  ;;  %s1718_s19 = int_to_ptr.vmem [resolvable:$false] %s1717_s19 }
  0xbc   : > { %s1719_s7 = scalar_lea.vmem %s1718_s19, 12288  ;;  %p1720_p5 = scmp.lt.s32.totalorder %s2281_s11, %s1718_s19 }
  0xbd   : > { %p1715_p12 = pnand %p1713_p1, %p1699_p7  ;;  %p1721_p10 = scmp.lt.s32.totalorder %s1719_s7, %s1712_s8 }
  0xbf   : > { %p1716_p0 = pneg %p1715_p12  ;;  %p1722_p3 = por %p1721_p10, %p1720_p5 }
  0xc1   : > { %p1723_p9 = pnand %p1722_p3, %p1716_p0 }
  0xc3   : > { %1726 = shalt.err (!%p1723_p9)
}
  0xc4   : > { %1443 = dma.hbm_to_vmem [thread:$0]  (!%p2674_p4), %s2279_s15, 6144, %s2281_s11, %s2129_s18, %s1895_s27, %s1896_s14, %s1897_s22  }
  0xc5   : > { %p2675_p7 = scmp.ne.s32.totalorder %s2648_s12, 0 }
  0xc6   : > { %s2676_s0 = sld [smem:[#allocation31_spill]] (!%p2675_p7)  ;;  %s305_s2 = sand.u32 (!%p2675_p7), 1, %s1865_s25  }
  0xc7   : > { %303 = sbr.rel (%p2675_p7) target bundleno = 516 (0x204), region = 40  ;;  %s2315_s10 = sshll.u32 (!%p2675_p7), %s305_s2, 3 }
  0xc8   : > { %s306_s5 = scalar_lea.sflag (!%p2675_p7), [#allocation3], %s305_s2  ;;  %s309_s17 = scalar_lea.vmem (!%p2675_p7), [#allocation2], %s2315_s10 }
  0xcc   : > { %p2677_p13 = scmp.ne.s32.totalorder (!%p2675_p7), %s2676_s0, 0 }
  0xce   : > { %1812 = dma.done.wait (%p2677_p13), %s306_s5, 128  }
  0xcf   : > { %1814 = vsyncadd (%p2677_p13), %s306_s5, 4294967168  ;;  %s2678_s23 = sld [smem:[#allocation24_spill]]  ;;  %s2679_s13 = sld [smem:[#allocation20_spill]] }
  0xd0   : > { %s2680_s24 = sld [smem:[#allocation29_spill]] }
  0xd5   : > { %s314_s18 = sand.u32 1, %s2678_s23   ;;  %s316_s27 = sand.u32 1, %s2679_s13  }
  0xd6   : > { %s1410_s12 = smul.u32 48, %s316_s27  ;;  %s315_s14 = scalar_lea.sflag [#allocation6], %s314_s18 }
  0xd7   : > { %p2681_p4 = scmp.ne.s32.totalorder %s2680_s24, 0 }
  0xd8   : > { %s2324_s22 = scalar_lea.vmem [#allocation5], %s1410_s12 }
  0xd9   : > { %1816 = dma.done.wait (%p2681_p4), %s315_s14, 768  }
  0xda   : > { %1818 = vsyncadd (%p2681_p4), %s315_s14, 4294966528  ;;  %p2682_p8 = scmp.eq.s32.totalorder %s2678_s23, 0 }
  0xdc   : > { %1820 = dma.done.wait (%p2682_p8), [#allocation6], 16   ;;  %p2683_p2 = pmov %p2682_p8 }
  0xdd   : > { %s328_s15 = scalar_lea.sflag [#allocation9], %s314_s18  ;;  %s2334_s11 = scalar_lea.vmem [#allocation8], %s316_s27 }
  0xde   : > { %1822 = vsyncadd (%p2683_p2), [#allocation6], 4294967280 }
  0xdf   : > { %1824 = dma.done.wait (%p2681_p4), %s328_s15, 16  }
  0xe0   : > { %1826 = vsyncadd (%p2681_p4), %s328_s15, 4294967280  ;;  %s2684_s21 = sld [smem:[#allocation19_spill]]  ;;  %s2685_s8 = sld [smem:[#allocation25_spill]] }
  0xe6   : > { %s2341_s9 = sand.u32 1, %s2684_s21   ;;  %p2686_p6 = scmp.ne.s32.totalorder %s2685_s8, 0 }
  0xe7   : > { %s1411_s19 = smul.u32 384, %s2341_s9 }
  0xe9   : > { %s2344_s7 = scalar_lea.vmem [#allocation10], %s1411_s19 }
  0xea   : > { %1828 = dma.done.wait (%p2686_p6), %s328_s15, 6144  }
  0xeb   : > { %1830 = vsyncadd (%p2686_p6), %s328_s15, 4294961152  ;;  %v1899_v0 = vmov 0.0|0.0   ;;  %vm1900_vm0 = vmmov 0   ;;  %v1901_v1 = vmov 0.0   ;;  %v382_v2 = vld [vmem:[#allocation7] sm:$0x1]  ;;  %v403_v15 = vlaneseq }
  0xec   : > { %1398 = vmatprep.subr.bf16.mxu0 %v1899_v0  ;;  %1395 = vmatprep.mubr.msk.f32.mxu0 %vm1900_vm0, %v1901_v1  ;;  %v409_v3 = vld [vmem:[%s2324_s22] sm:$0xff]  ;;  %v383_v4 = vmul.f32 1.442695, %v382_v2  ;;  %v410_v5 = vld [vmem:[%s2324_s22 + $0x8] sm:$0xff]  ;;  %v411_v6 = vld [vmem:[%s2324_s22 + $0x10] sm:$0xff]  ;;  %vm1107_vm1 = vcmask 392192  }
  0xed   : > { %v412_v7 = vld [vmem:[%s2324_s22 + $0x18] sm:$0xff]  ;;  %v1399_v8 = vpack.c.bf16 %v410_v5, %v409_v3  ;;  %v413_v10 = vld [vmem:[%s2324_s22 + $0x20] sm:$0xff]  ;;  %v414_v11 = vld [vmem:[%s2324_s22 + $0x28] sm:$0xff]  ;;  %v404_v16 = vshrl.u32 %v403_v15, 7  ;;  %vm1086_vm6 = vcmask 1041409   ;;  %vm1089_vm7 = vcmask 1042434  }
  0xee   : > { %1571 = vpow2.f32 %v383_v4  ;;  %v1402_v9 = vpack.c.bf16 %v412_v7, %v411_v6  ;;  %v1405_v12 = vpack.c.bf16 %v414_v11, %v413_v10  ;;  %v381_v14 = vld [vmem:[%s309_s17] sm:$0xff]  ;;  %v473_v42 = vld [vmem:[%s2344_s7 + $0x60] sm:$0xff]  ;;  %vm1092_vm8 = vcmask 1043459   ;;  %s2687_s0 = sld [smem:[#allocation23_spill]]  ;;  %s2688_s2 = sld [smem:[#allocation22_spill]] }
  0xef   : > { %1400 = vmatpush3.bf16.msra.mxu0 %v1399_v8  ;;  %v2358_v20 = vsub.s32 0, %v404_v16  ;;  %v431_v24 = vsub.s32 2, %v404_v16  ;;  %v424_v25 = vsub.s32 1, %v404_v16  ;;  %v438_v29 = vsub.s32 3, %v404_v16  ;;  %v392_v40 = vld [vmem:[%s2334_s11] sm:$0x1] }
  0xf0   : > { %1401 = vmatprep.subr.bf16.mxu0 %v1899_v0  ;;  %v445_v32 = vsub.s32 4, %v404_v16  ;;  %v452_v34 = vsub.s32 5, %v404_v16  ;;  %v459_v36 = vsub.s32 6, %v404_v16  ;;  %v466_v38 = vsub.s32 7, %v404_v16  ;;  %v472_v43 = vld [vmem:[%s2344_s7 + $0x30] sm:$0xff]  ;;  %v577_v48 = vld [vmem:[%s2344_s7 + $0x68] sm:$0xff] }
  0xf1   : > { %v393_v41 = vmul.f32 1.442695, %v392_v40  ;;  %v576_v49 = vld [vmem:[%s2344_s7 + $0x38] sm:$0xff]  ;;  %v474_v63 = vld [vmem:[%s2344_s7 + $0x90] sm:$0xff]  ;;  %vm1095_vm9 = vcmask 1044484   ;;  %s1370_s5 = sshll.u32 %s2341_s9, 3 }
  0xf2   : > { %vm1098_vm10 = vcmask 1045509   ;;  %vm1101_vm11 = vcmask 1046534   ;;  %s2689_s23 = sld [smem:[#allocation26_spill]]  ;;  %vm1104_vm12 = vcmask 1047559   ;;  %s379_s24 = scalar_lea.vmem [#allocation11], %s1370_s5 }
  0xf3   : > { %1403 = vmatpush3.bf16.msra.mxu0 %v1402_v9  ;;  %s1198_s18 = sshll.u32 %s379_s24, 4  ;;  %s2690_s14 = sld [smem:[#allocation35_spill]]  ;;  %s2521_s18 = int_to_ptr.vmem [resolvable:$true] %s1198_s18 }
  0xf4   : > { %1404 = vmatprep.subr.bf16.mxu0 %v1899_v0  ;;  %v471_v0 = vld [vmem:[%s2344_s7] sm:$0xff]  ;;  %s1412_s10 = smul.u32 3, %s2687_s0  ;;  %s1183_s15 = scalar_lea.sflag [#allocation4], %s2341_s9 }
  0xf5   : > { %s1727_s11 = scalar_lea.vmem %s2521_s18, 128  ;;  %s1902_s21 = smov [#allocation11]  }
  0xf6   : > { %s1194_s17 = sadd.s32 %s2688_s2, %s1412_s10  ;;  %p1728_p11 = scmp.ne.s32.totalorder %s2521_s18, %s1727_s11 }
  0xf7   : > { %1406 = vmatpush3.bf16.msra.mxu0 %v1405_v12  ;;  %s1373_s13 = sshll.u32 %s1194_s17, 7  ;;  %s1731_s8 = sshll.u32 %s1902_s21, 4  ;;  %s1732_s8 = int_to_ptr.vmem [resolvable:$false] %s1731_s8 }
  0xf8   : > { %v1572_v13 = vpop.eup %1571  ;;  %p2691_p1 = scmp.ne.s32.totalorder %s2689_s23, 0  ;;  %s1733_s19 = scalar_lea.vmem %s1732_s8, 256 }
  0xf9   : > { %1573 = vrsqrt.f32 %v1572_v13  ;;  %vm387_vm2 = vcmp.eq.f32.partialorder %v1572_v13, inf  ;;  %v390_v18 = vand.u32 2147483648, %v1572_v13  ;;  %vm389_vm3 = vcmp.eq.f32.partialorder %v1572_v13, 0.0  ;;  %s2519_s22 = scalar_lea.hbm %s2690_s14, %s1373_s13  ;;  %p1734_p5 = scmp.lt.s32.totalorder %s2521_s18, %s1732_s8 }
  0xfa   : > { %1396 = vmatmul.mubr.msk.f32.vlgmr.msra.gmra.mrb[0].mxu0 %vm1107_vm1, %v381_v14  ;;  %1575 = vpow2.f32 %v393_v41  ;;  %p1729_p12 = pnand %p1728_p11, %p2691_p1  ;;  %p1735_p10 = scmp.lt.s32.totalorder %s1733_s19, %s1727_s11 }
  0xfc   : > { %p1730_p0 = pneg %p1729_p12  ;;  %p1736_p3 = por %p1735_p10, %p1734_p5 }
  0xfe   : > { %p1737_p9 = pnand %p1736_p3, %p1730_p0 }
 0x103   : > { %v1574_v17 = vpop.eup %1573 }
 0x104   : > { %v386_v19 = vmul.f32 %v1574_v17, %v1572_v13  ;;  %v2367_v54 = vpop.eup %1575 }
 0x105   : > { %1577 = vrsqrt.f32 %v2367_v54  ;;  %vm397_vm4 = vcmp.eq.f32.partialorder %v2367_v54, inf  ;;  %vm399_vm5 = vcmp.eq.f32.partialorder %v2367_v54, 0.0 }
 0x106   : > { %v388_v21 = vsel %vm387_vm2, %v1572_v13, %v386_v19  ;;  %v578_v13 = vld [vmem:[%s2344_s7 + $0x98] sm:$0xff] }
 0x107   : > { %v391_v22 = vsel %vm389_vm3, %v390_v18, %v388_v21 }
 0x108   : > { %v406_v23 = vrot.slane %v391_v22, %v2358_v20 }
 0x10a   : > { %v408_v26 = vmul.f32 %v406_v23, %v381_v14  ;;  %v575_v14 = vld [vmem:[%s2344_s7 + $0x8] sm:$0xff] }
 0x10c   : > { %v432_v27 = vrot.slane %v408_v26, %v431_v24  ;;  %v425_v28 = vrot.slane %v408_v26, %v424_v25  ;;  %v439_v30 = vrot.slane %v408_v26, %v438_v29  ;;  %v418_v31 = vrot.slane %v408_v26, %v2358_v20 }
 0x10d   : > { %v446_v33 = vrot.slane %v408_v26, %v445_v32  ;;  %v453_v35 = vrot.slane %v408_v26, %v452_v34  ;;  %v460_v37 = vrot.slane %v408_v26, %v459_v36  ;;  %v467_v39 = vrot.slane %v408_v26, %v466_v38  ;;  %v475_v26 = vld [vmem:[%s2344_s7 + $0xc0] sm:$0xff] }
 0x10e   : > { %434 = vbcast.lane.b32.xlu1 %v432_v27, 256  ;;  %427 = vbcast.lane.b32.xlu0 %v425_v28, 256 }
 0x112   : > { %553 = vbcast.lane.b32.xlu1 %v432_v27, 264  ;;  %549 = vbcast.lane.b32.xlu0 %v425_v28, 264 }
 0x116   : > { %441 = vbcast.lane.b32.xlu1 %v439_v30, 256  ;;  %420 = vbcast.lane.b32.xlu0 %v418_v31, 256 }
 0x11a   : > { %557 = vbcast.lane.b32.xlu1 %v439_v30, 264  ;;  %545 = vbcast.lane.b32.xlu0 %v418_v31, 264 }
 0x11e   : > { %448 = vbcast.lane.b32.xlu1 %v446_v33, 256  ;;  %653 = vbcast.lane.b32.xlu0 %v425_v28, 272 }
 0x122   : > { %657 = vbcast.lane.b32.xlu1 %v432_v27, 272  ;;  %561 = vbcast.lane.b32.xlu0 %v446_v33, 264 }
 0x126   : > { %565 = vbcast.lane.b32.xlu1 %v453_v35, 264  ;;  %455 = vbcast.lane.b32.xlu0 %v453_v35, 256 }
 0x12a   : > { %661 = vbcast.lane.b32.xlu1 %v439_v30, 272  ;;  %649 = vbcast.lane.b32.xlu0 %v418_v31, 272 }
 0x12e   : > { %462 = vbcast.lane.b32.xlu1 %v460_v37, 256  ;;  %757 = vbcast.lane.b32.xlu0 %v425_v28, 280 }
 0x132   : > { %665 = vbcast.lane.b32.xlu1 %v446_v33, 272  ;;  %569 = vbcast.lane.b32.xlu0 %v460_v37, 264 }
 0x136   : > { %469 = vbcast.lane.b32.xlu1 %v467_v39, 256  ;;  %761 = vbcast.lane.b32.xlu0 %v432_v27, 280 }
 0x13a   : > { %669 = vbcast.lane.b32.xlu1 %v453_v35, 272  ;;  %573 = vbcast.lane.b32.xlu0 %v467_v39, 264 }
 0x13e   : > { %765 = vbcast.lane.b32.xlu1 %v439_v30, 280  ;;  %753 = vbcast.lane.b32.xlu0 %v418_v31, 280 }
 0x142   : > { %673 = vbcast.lane.b32.xlu1 %v460_v37, 272  ;;  %861 = vbcast.lane.b32.xlu0 %v425_v28, 288 }
 0x146   : > { %865 = vbcast.lane.b32.xlu1 %v432_v27, 288  ;;  %769 = vbcast.lane.b32.xlu0 %v446_v33, 280 }
 0x14a   : > { %773 = vbcast.lane.b32.xlu1 %v453_v35, 280  ;;  %677 = vbcast.lane.b32.xlu0 %v467_v39, 272 }
 0x14e   : > { %869 = vbcast.lane.b32.xlu1 %v439_v30, 288  ;;  %857 = vbcast.lane.b32.xlu0 %v418_v31, 288 }
 0x152   : > { %777 = vbcast.lane.b32.xlu1 %v460_v37, 280  ;;  %965 = vbcast.lane.b32.xlu0 %v425_v28, 296 }
 0x156   : > { %969 = vbcast.lane.b32.xlu1 %v432_v27, 296  ;;  %873 = vbcast.lane.b32.xlu0 %v446_v33, 288  ;;  %v680_v27 = vld [vmem:[%s2344_s7 + $0x40] sm:$0xff] }
 0x15a   : > { %877 = vbcast.lane.b32.xlu1 %v453_v35, 288  ;;  %781 = vbcast.lane.b32.xlu0 %v467_v39, 280 }
 0x15e   : > { %973 = vbcast.lane.b32.xlu1 %v439_v30, 296  ;;  %961 = vbcast.lane.b32.xlu0 %v418_v31, 296 }
 0x162   : > { %977 = vbcast.lane.b32.xlu1 %v446_v33, 296  ;;  %881 = vbcast.lane.b32.xlu0 %v460_v37, 288 }
 0x166   : > { %981 = vbcast.lane.b32.xlu1 %v453_v35, 296  ;;  %885 = vbcast.lane.b32.xlu0 %v467_v39, 288 }
 0x16a   : > { %989 = vbcast.lane.b32.xlu1 %v467_v39, 296  ;;  %985 = vbcast.lane.b32.xlu0 %v460_v37, 296 }
 0x180   : > { %v435_v44 = vpop.permute.xlu1 %434  ;;  %v428_v45 = vpop.permute.xlu0 %427 }
 0x181   : > { %v481_v46 = vmul.f32 %v473_v42, %v435_v44  ;;  %v480_v47 = vmul.f32 %v472_v43, %v428_v45  ;;  %v1578_v42 = vpop.eup %1577 }
 0x183   : > { %v499_v50 = vrot.slane %v481_v46, 4  ;;  %v493_v51 = vrot.slane %v480_v47, 4 }
 0x184   : > { %v554_v52 = vpop.permute.xlu1 %553  ;;  %v550_v53 = vpop.permute.xlu0 %549 }
 0x185   : > { %v500_v55 = vadd.f32 %v499_v50, %v481_v46  ;;  %v494_v56 = vadd.f32 %v493_v51, %v480_v47  ;;  %v585_v57 = vmul.f32 %v577_v48, %v554_v52  ;;  %v584_v58 = vmul.f32 %v576_v49, %v550_v53  ;;  %v681_v47 = vld [vmem:[%s2344_s7 + $0x70] sm:$0xff]  ;;  %v579_v48 = vld [vmem:[%s2344_s7 + $0xc8] sm:$0xff] }
 0x187   : > { %v501_v59 = vrot.slane %v500_v55, 2  ;;  %v495_v60 = vrot.slane %v494_v56, 2  ;;  %v603_v61 = vrot.slane %v585_v57, 4  ;;  %v597_v62 = vrot.slane %v584_v58, 4 }
 0x188   : > { %v442_v1 = vpop.permute.xlu1 %441  ;;  %v421_v2 = vpop.permute.xlu0 %420 }
 0x189   : > { %v502_v3 = vadd.f32 %v501_v59, %v500_v55  ;;  %v496_v4 = vadd.f32 %v495_v60, %v494_v56  ;;  %v604_v5 = vadd.f32 %v603_v61, %v585_v57  ;;  %v598_v6 = vadd.f32 %v597_v62, %v584_v58 }
 0x18a   : > { %v482_v7 = vmul.f32 %v474_v63, %v442_v1  ;;  %v479_v8 = vmul.f32 %v471_v0, %v421_v2  ;;  %v396_v2 = vmul.f32 %v1578_v42, %v2367_v54  ;;  %v477_v42 = vld [vmem:[%s2344_s7 + $0x120] sm:$0xff] }
 0x18b   : > { %v503_v9 = vrot.slane %v502_v3, 1  ;;  %v497_v10 = vrot.slane %v496_v4, 1  ;;  %v605_v11 = vrot.slane %v604_v5, 2  ;;  %v599_v12 = vrot.slane %v598_v6, 2 }
 0x18c   : > { %v505_v15 = vrot.slane %v482_v7, 4  ;;  %v487_v16 = vrot.slane %v479_v8, 4  ;;  %v558_v17 = vpop.permute.xlu1 %557  ;;  %v546_v18 = vpop.permute.xlu0 %545 }
 0x18d   : > { %v606_v19 = vadd.f32 %v605_v11, %v604_v5  ;;  %v600_v21 = vadd.f32 %v599_v12, %v598_v6  ;;  %v586_v24 = vmul.f32 %v578_v13, %v558_v17  ;;  %v583_v25 = vmul.f32 %v575_v14, %v546_v18  ;;  %v580_v6 = vld [vmem:[%s2344_s7 + $0xf8] sm:$0xff] }
 0x18e   : > { %v506_v22 = vadd.f32 %v505_v15, %v482_v7  ;;  %v488_v23 = vadd.f32 %v487_v16, %v479_v8  ;;  %v504_v28 = vadd.f32 %v503_v9, %v502_v3  ;;  %v498_v29 = vadd.f32 %v497_v10, %v496_v4  ;;  %v476_v7 = vld [vmem:[%s2344_s7 + $0xf0] sm:$0xff] }
 0x18f   : > { %v607_v30 = vrot.slane %v606_v19, 1  ;;  %v601_v31 = vrot.slane %v600_v21, 1  ;;  %v609_v34 = vrot.slane %v586_v24, 4  ;;  %v591_v35 = vrot.slane %v583_v25, 4 }
 0x190   : > { %v507_v32 = vrot.slane %v506_v22, 2  ;;  %v489_v33 = vrot.slane %v488_v23, 2  ;;  %v449_v36 = vpop.permute.xlu1 %448  ;;  %v654_v37 = vpop.permute.xlu0 %653 }
 0x191   : > { %v608_v38 = vadd.f32 %v607_v30, %v606_v19  ;;  %v602_v39 = vadd.f32 %v601_v31, %v600_v21  ;;  %v483_v40 = vmul.f32 %v475_v26, %v449_v36  ;;  %v688_v41 = vmul.f32 %v680_v27, %v654_v37  ;;  %v682_v26 = vld [vmem:[%s2344_s7 + $0xa0] sm:$0xff]  ;;  %v679_v27 = vld [vmem:[%s2344_s7 + $0x10] sm:$0xff] }
 0x192   : > { %v508_v43 = vadd.f32 %v507_v32, %v506_v22  ;;  %v490_v44 = vadd.f32 %v489_v33, %v488_v23  ;;  %v610_v45 = vadd.f32 %v609_v34, %v586_v24  ;;  %v592_v46 = vadd.f32 %v591_v35, %v583_v25 }
 0x193   : > { %v2378_v49 = vadd.f32 %v608_v38, %v504_v28  ;;  %v640_v50 = vadd.f32 %v602_v39, %v498_v29  ;;  %v511_v51 = vrot.slane %v483_v40, 4  ;;  %v701_v52 = vrot.slane %v688_v41, 4 }
 0x194   : > { %v509_v53 = vrot.slane %v508_v43, 1  ;;  %v491_v55 = vrot.slane %v490_v44, 1  ;;  %v611_v56 = vrot.slane %v610_v45, 2  ;;  %v593_v57 = vrot.slane %v592_v46, 2  ;;  %v658_v58 = vpop.permute.xlu1 %657  ;;  %v562_v59 = vpop.permute.xlu0 %561 }
 0x195   : > { %v512_v60 = vadd.f32 %v511_v51, %v483_v40  ;;  %v702_v61 = vadd.f32 %v701_v52, %v688_v41  ;;  %v689_v62 = vmul.f32 %v681_v47, %v658_v58  ;;  %v587_v63 = vmul.f32 %v579_v48, %v562_v59 }
 0x196   : > { %v612_v0 = vadd.f32 %v611_v56, %v610_v45  ;;  %v594_v1 = vadd.f32 %v593_v57, %v592_v46  ;;  %v510_v8 = vadd.f32 %v509_v53, %v508_v43  ;;  %v492_v9 = vadd.f32 %v491_v55, %v490_v44  ;;  %v784_v43 = vld [vmem:[%s2344_s7 + $0x48] sm:$0xff] }
 0x197   : > { %v703_v3 = vrot.slane %v702_v61, 2  ;;  %v707_v4 = vrot.slane %v689_v62, 4  ;;  %v615_v5 = vrot.slane %v587_v63, 4  ;;  %v513_v14 = vrot.slane %v512_v60, 2 }
 0x198   : > { %v613_v10 = vrot.slane %v612_v0, 1  ;;  %v595_v11 = vrot.slane %v594_v1, 1  ;;  %v566_v12 = vpop.permute.xlu1 %565  ;;  %v456_v13 = vpop.permute.xlu0 %455  ;;  %v398_v36 = vsel %vm397_vm4, %v2367_v54, %v396_v2  ;;  %v400_v37 = vand.u32 2147483648, %v2367_v54 }
 0x199   : > { %v704_v15 = vadd.f32 %v703_v3, %v702_v61  ;;  %v708_v16 = vadd.f32 %v707_v4, %v689_v62  ;;  %v616_v17 = vadd.f32 %v615_v5, %v587_v63  ;;  %v588_v21 = vmul.f32 %v580_v6, %v566_v12  ;;  %v683_v62 = vld [vmem:[%s2344_s7 + $0xd0] sm:$0xff]  ;;  %v581_v63 = vld [vmem:[%s2344_s7 + $0x128] sm:$0xff] }
 0x19a   : > { %v614_v18 = vadd.f32 %v613_v10, %v612_v0  ;;  %v596_v19 = vadd.f32 %v595_v11, %v594_v1  ;;  %v484_v22 = vmul.f32 %v476_v7, %v456_v13  ;;  %v514_v34 = vadd.f32 %v513_v14, %v512_v60 }
 0x19b   : > { %v705_v23 = vrot.slane %v704_v15, 1  ;;  %v709_v24 = vrot.slane %v708_v16, 2  ;;  %v617_v25 = vrot.slane %v616_v17, 2  ;;  %v621_v30 = vrot.slane %v588_v21, 4 }
 0x19c   : > { %v2386_v28 = vadd.f32 %v614_v18, %v510_v8  ;;  %v2388_v29 = vadd.f32 %v596_v19, %v492_v9  ;;  %v517_v31 = vrot.slane %v484_v22, 4  ;;  %v662_v32 = vpop.permute.xlu1 %661  ;;  %v650_v33 = vpop.permute.xlu0 %649  ;;  %v515_v56 = vrot.slane %v514_v34, 1 }
 0x19d   : > { %v706_v35 = vadd.f32 %v705_v23, %v704_v15  ;;  %v622_v38 = vadd.f32 %v621_v30, %v588_v21  ;;  %v690_v40 = vmul.f32 %v682_v26, %v662_v32  ;;  %v687_v41 = vmul.f32 %v679_v27, %v650_v33  ;;  %v785_v23 = vld [vmem:[%s2344_s7 + $0x78] sm:$0xff] }
 0x19e   : > { %v518_v39 = vadd.f32 %v517_v31, %v484_v22  ;;  %v710_v45 = vadd.f32 %v709_v24, %v708_v16  ;;  %v618_v46 = vadd.f32 %v617_v25, %v616_v17  ;;  %v401_v3 = vsel %vm399_vm5, %v400_v37, %v398_v36  ;;  %v478_v22 = vld [vmem:[%s2344_s7 + $0x150] sm:$0xff] }
 0x19f   : > { %v2396_v44 = vadd.f32 %v706_v35, %v640_v50  ;;  %v623_v47 = vrot.slane %v622_v38, 2  ;;  %v713_v51 = vrot.slane %v690_v40, 4  ;;  %v695_v52 = vrot.slane %v687_v41, 4 }
 0x1a0   : > { %v519_v48 = vrot.slane %v518_v39, 2  ;;  %v463_v53 = vpop.permute.xlu1 %462  ;;  %v758_v55 = vpop.permute.xlu0 %757  ;;  %v711_v0 = vrot.slane %v710_v45, 1  ;;  %v619_v4 = vrot.slane %v618_v46, 1  ;;  %v516_v14 = vadd.f32 %v515_v56, %v514_v34 }
 0x1a1   : > { %v485_v57 = vmul.f32 %v477_v42, %v463_v53  ;;  %v792_v58 = vmul.f32 %v784_v43, %v758_v55  ;;  %v624_v59 = vadd.f32 %v623_v47, %v622_v38  ;;  %v714_v61 = vadd.f32 %v713_v51, %v690_v40 }
 0x1a2   : > { %v520_v60 = vadd.f32 %v519_v48, %v518_v39  ;;  %v696_v50 = vadd.f32 %v695_v52, %v687_v41  ;;  %v712_v24 = vadd.f32 %v711_v0, %v710_v45  ;;  %v620_v25 = vadd.f32 %v619_v4, %v618_v46  ;;  %v684_v45 = vld [vmem:[%s2344_s7 + $0x100] sm:$0xff]  ;;  %v582_v46 = vld [vmem:[%s2344_s7 + $0x158] sm:$0xff] }
 0x1a3   : > { %v523_v1 = vrot.slane %v485_v57, 4  ;;  %v805_v2 = vrot.slane %v792_v58, 4  ;;  %v625_v5 = vrot.slane %v624_v59, 1  ;;  %v715_v6 = vrot.slane %v714_v61, 2  ;;  %v783_v0 = vld [vmem:[%s2344_s7 + $0x18] sm:$0xff] }
 0x1a4   : > { %v697_v7 = vrot.slane %v696_v50, 2  ;;  %v666_v8 = vpop.permute.xlu1 %665  ;;  %v570_v9 = vpop.permute.xlu0 %569  ;;  %v521_v15 = vrot.slane %v520_v60, 1  ;;  %v2408_v47 = vadd.f32 %v712_v24, %v2378_v49  ;;  %v2411_v55 = vrot.slane %v401_v3, %v2358_v20 }
 0x1a5   : > { %v524_v10 = vadd.f32 %v523_v1, %v485_v57  ;;  %v806_v11 = vadd.f32 %v805_v2, %v792_v58  ;;  %v691_v12 = vmul.f32 %v683_v62, %v666_v8  ;;  %v589_v13 = vmul.f32 %v581_v63, %v570_v9  ;;  %v786_v63 = vld [vmem:[%s2344_s7 + $0xa8] sm:$0xff] }
 0x1a6   : > { %v716_v16 = vadd.f32 %v715_v6, %v714_v61  ;;  %v698_v17 = vadd.f32 %v697_v7, %v696_v50  ;;  %v626_v26 = vadd.f32 %v625_v5, %v624_v59  ;;  %v522_v36 = vadd.f32 %v521_v15, %v520_v60 }
 0x1a7   : > { %v525_v18 = vrot.slane %v524_v10, 2  ;;  %v807_v19 = vrot.slane %v806_v11, 2  ;;  %v719_v54 = vrot.slane %v691_v12, 4  ;;  %v627_v21 = vrot.slane %v589_v13, 4 }
 0x1a8   : > { %v717_v27 = vrot.slane %v716_v16, 1  ;;  %v470_v30 = vpop.permute.xlu1 %469  ;;  %v762_v31 = vpop.permute.xlu0 %761  ;;  %v699_v32 = vrot.slane %v698_v17, 1  ;;  %v2413_v56 = vadd.f32 %v620_v25, %v516_v14  ;;  %v2417_v49 = vadd.f32 %v626_v26, %v522_v36 }
 0x1a9   : > { %v808_v33 = vadd.f32 %v807_v19, %v806_v11  ;;  %v720_v34 = vadd.f32 %v719_v54, %v691_v12  ;;  %v628_v35 = vadd.f32 %v627_v21, %v589_v13  ;;  %v526_v37 = vadd.f32 %v525_v18, %v524_v10 }
 0x1aa   : > { %v486_v38 = vmul.f32 %v478_v22, %v470_v30  ;;  %v793_v39 = vmul.f32 %v785_v23, %v762_v31  ;;  %v718_v40 = vadd.f32 %v717_v27, %v716_v16  ;;  %v700_v57 = vadd.f32 %v699_v32, %v698_v17  ;;  %v685_v16 = vld [vmem:[%s2344_s7 + $0x130] sm:$0xff] }
 0x1ab   : > { %v809_v41 = vrot.slane %v808_v33, 1  ;;  %v721_v42 = vrot.slane %v720_v34, 2  ;;  %v629_v43 = vrot.slane %v628_v35, 2  ;;  %v527_v2 = vrot.slane %v526_v37, 1  ;;  %v888_v17 = vld [vmem:[%s2344_s7 + $0x50] sm:$0xff] }
 0x1ac   : > { %v529_v48 = vrot.slane %v486_v38, 4  ;;  %v811_v51 = vrot.slane %v793_v39, 4  ;;  %v670_v52 = vpop.permute.xlu1 %669  ;;  %v574_v53 = vpop.permute.xlu0 %573  ;;  %v2420_v1 = vadd.f32 %v718_v40, %v2386_v28  ;;  %v2423_v9 = vadd.f32 %v700_v57, %v2388_v29  ;;  %v889_v40 = vld [vmem:[%s2344_s7 + $0x80] sm:$0xff] }
 0x1ad   : > { %v722_v58 = vadd.f32 %v721_v42, %v720_v34  ;;  %v630_v59 = vadd.f32 %v629_v43, %v628_v35  ;;  %v692_v50 = vmul.f32 %v684_v45, %v670_v52  ;;  %v590_v62 = vmul.f32 %v582_v46, %v574_v53 }
 0x1ae   : > { %v530_v60 = vadd.f32 %v529_v48, %v486_v38  ;;  %v812_v61 = vadd.f32 %v811_v51, %v793_v39  ;;  %v810_v20 = vadd.f32 %v809_v41, %v808_v33  ;;  %v528_v18 = vadd.f32 %v527_v2, %v526_v37  ;;  %v787_v41 = vld [vmem:[%s2344_s7 + $0xd8] sm:$0xff] }
 0x1af   : > { %v725_v5 = vrot.slane %v692_v50, 4  ;;  %v633_v6 = vrot.slane %v590_v62, 4  ;;  %v723_v10 = vrot.slane %v722_v58, 1  ;;  %v631_v13 = vrot.slane %v630_v59, 1 }
 0x1b0   : > { %v531_v3 = vrot.slane %v530_v60, 2  ;;  %v813_v4 = vrot.slane %v812_v61, 2  ;;  %v766_v7 = vpop.permute.xlu1 %765  ;;  %v754_v8 = vpop.permute.xlu0 %753  ;;  %v2428_v19 = vadd.f32 %v810_v20, %v2396_v44  ;;  %v788_v20 = vld [vmem:[%s2344_s7 + $0x108] sm:$0xff] }
 0x1b1   : > { %v794_v11 = vmul.f32 %v786_v63, %v766_v7  ;;  %v791_v12 = vmul.f32 %v783_v0, %v754_v8  ;;  %v726_v28 = vadd.f32 %v725_v5, %v692_v50  ;;  %v634_v15 = vadd.f32 %v633_v6, %v590_v62 }
 0x1b2   : > { %v814_v14 = vadd.f32 %v813_v4, %v812_v61  ;;  %v532_v22 = vadd.f32 %v531_v3, %v530_v60  ;;  %v724_v33 = vadd.f32 %v723_v10, %v722_v58  ;;  %v632_v34 = vadd.f32 %v631_v13, %v630_v59  ;;  %v686_v3 = vld [vmem:[%s2344_s7 + $0x160] sm:$0xff] }
 0x1b3   : > { %v817_v54 = vrot.slane %v794_v11, 4  ;;  %v799_v21 = vrot.slane %v791_v12, 4  ;;  %v727_v24 = vrot.slane %v726_v28, 2  ;;  %v635_v29 = vrot.slane %v634_v15, 2 }
 0x1b4   : > { %v815_v23 = vrot.slane %v814_v14, 1  ;;  %v674_v25 = vpop.permute.xlu1 %673  ;;  %v862_v26 = vpop.permute.xlu0 %861  ;;  %v533_v42 = vrot.slane %v532_v22, 1  ;;  %v2435_v4 = vadd.f32 %v724_v33, %v2413_v56  ;;  %v2437_v5 = vadd.f32 %v632_v34, %v528_v18 }
 0x1b5   : > { %v818_v27 = vadd.f32 %v817_v54, %v794_v11  ;;  %v800_v30 = vadd.f32 %v799_v21, %v791_v12  ;;  %v693_v31 = vmul.f32 %v685_v16, %v674_v25  ;;  %v896_v32 = vmul.f32 %v888_v17, %v862_v26  ;;  %v890_v54 = vld [vmem:[%s2344_s7 + $0xb0] sm:$0xff]  ;;  %v887_v21 = vld [vmem:[%s2344_s7 + $0x20] sm:$0xff] }
 0x1b6   : > { %v728_v35 = vadd.f32 %v727_v24, %v726_v28  ;;  %v636_v36 = vadd.f32 %v635_v29, %v634_v15  ;;  %v816_v43 = vadd.f32 %v815_v23, %v814_v14  ;;  %v534_v11 = vadd.f32 %v533_v42, %v532_v22 }
 0x1b7   : > { %v819_v44 = vrot.slane %v818_v27, 2  ;;  %v801_v37 = vrot.slane %v800_v30, 2  ;;  %v731_v38 = vrot.slane %v693_v31, 4  ;;  %v909_v39 = vrot.slane %v896_v32, 4 }
 0x1b8   : > { %v729_v45 = vrot.slane %v728_v35, 1  ;;  %v637_v46 = vrot.slane %v636_v36, 1  ;;  %v866_v48 = vpop.permute.xlu1 %865  ;;  %v770_v51 = vpop.permute.xlu0 %769  ;;  %v2440_v12 = vadd.f32 %v816_v43, %v2408_v47 }
 0x1b9   : > { %v820_v52 = vadd.f32 %v819_v44, %v818_v27  ;;  %v802_v53 = vadd.f32 %v801_v37, %v800_v30  ;;  %v732_v57 = vadd.f32 %v731_v38, %v693_v31  ;;  %v910_v58 = vadd.f32 %v909_v39, %v896_v32  ;;  %v789_v44 = vld [vmem:[%s2344_s7 + $0x138] sm:$0xff] }
 0x1ba   : > { %v730_v59 = vadd.f32 %v729_v45, %v728_v35  ;;  %v638_v60 = vadd.f32 %v637_v46, %v636_v36  ;;  %v897_v61 = vmul.f32 %v889_v40, %v866_v48  ;;  %v795_v50 = vmul.f32 %v787_v41, %v770_v51  ;;  %v992_v37 = vld [vmem:[%s2344_s7 + $0x58] sm:$0xff] }
 0x1bb   : > { %v821_v62 = vrot.slane %v820_v52, 1  ;;  %v803_v63 = vrot.slane %v802_v53, 1  ;;  %v733_v0 = vrot.slane %v732_v57, 2  ;;  %v911_v2 = vrot.slane %v910_v58, 2 }
 0x1bc   : > { %v915_v6 = vrot.slane %v897_v61, 4  ;;  %v823_v7 = vrot.slane %v795_v50, 4  ;;  %v774_v8 = vpop.permute.xlu1 %773  ;;  %v678_v10 = vpop.permute.xlu0 %677  ;;  %v2445_v56 = vadd.f32 %v730_v59, %v2417_v49  ;;  %v2447_v18 = vadd.f32 %v638_v60, %v534_v11 }
 0x1bd   : > { %v734_v13 = vadd.f32 %v733_v0, %v732_v57  ;;  %v912_v14 = vadd.f32 %v911_v2, %v910_v58  ;;  %v796_v16 = vmul.f32 %v788_v20, %v774_v8  ;;  %v694_v17 = vmul.f32 %v686_v3, %v678_v10  ;;  %v993_v0 = vld [vmem:[%s2344_s7 + $0x88] sm:$0xff]  ;;  %v891_v2 = vld [vmem:[%s2344_s7 + $0xe0] sm:$0xff] }
 0x1be   : > { %v916_v28 = vadd.f32 %v915_v6, %v897_v61  ;;  %v824_v15 = vadd.f32 %v823_v7, %v795_v50  ;;  %v822_v23 = vadd.f32 %v821_v62, %v820_v52  ;;  %v804_v24 = vadd.f32 %v803_v63, %v802_v53 }
 0x1bf   : > { %v829_v29 = vrot.slane %v796_v16, 4  ;;  %v737_v25 = vrot.slane %v694_v17, 4  ;;  %v735_v30 = vrot.slane %v734_v13, 1  ;;  %v913_v31 = vrot.slane %v912_v14, 1 }
 0x1c0   : > { %v917_v22 = vrot.slane %v916_v28, 2  ;;  %v825_v47 = vrot.slane %v824_v15, 2  ;;  %v870_v26 = vpop.permute.xlu1 %869  ;;  %v858_v27 = vpop.permute.xlu0 %857  ;;  %v2452_v38 = vadd.f32 %v822_v23, %v2420_v1  ;;  %v2455_v39 = vadd.f32 %v804_v24, %v2423_v9 }
 0x1c1   : > { %v898_v32 = vmul.f32 %v890_v54, %v870_v26  ;;  %v895_v33 = vmul.f32 %v887_v21, %v858_v27  ;;  %v830_v49 = vadd.f32 %v829_v29, %v796_v16  ;;  %v738_v36 = vadd.f32 %v737_v25, %v694_v17  ;;  %v790_v29 = vld [vmem:[%s2344_s7 + $0x168] sm:$0xff] }
 0x1c2   : > { %v918_v34 = vadd.f32 %v917_v22, %v916_v28  ;;  %v826_v35 = vadd.f32 %v825_v47, %v824_v15  ;;  %v736_v59 = vadd.f32 %v735_v30, %v734_v13  ;;  %v914_v1 = vadd.f32 %v913_v31, %v912_v14  ;;  %v892_v47 = vld [vmem:[%s2344_s7 + $0x110] sm:$0xff] }
 0x1c3   : > { %v921_v40 = vrot.slane %v898_v32, 4  ;;  %v903_v41 = vrot.slane %v895_v33, 4  ;;  %v831_v45 = vrot.slane %v830_v49, 2  ;;  %v739_v46 = vrot.slane %v738_v36, 2 }
 0x1c4   : > { %v919_v42 = vrot.slane %v918_v34, 1  ;;  %v827_v43 = vrot.slane %v826_v35, 1  ;;  %v778_v48 = vpop.permute.xlu1 %777  ;;  %v966_v51 = vpop.permute.xlu0 %965  ;;  %v2460_v15 = vadd.f32 %v736_v59, %v2437_v5  ;;  %v952_v25 = vadd.f32 %v914_v1, %v2428_v19 }
 0x1c5   : > { %v922_v52 = vadd.f32 %v921_v40, %v898_v32  ;;  %v904_v53 = vadd.f32 %v903_v41, %v895_v33  ;;  %v797_v57 = vmul.f32 %v789_v44, %v778_v48  ;;  %v1000_v58 = vmul.f32 %v992_v37, %v966_v51  ;;  %v994_v40 = vld [vmem:[%s2344_s7 + $0xb8] sm:$0xff]  ;;  %v991_v41 = vld [vmem:[%s2344_s7 + $0x28] sm:$0xff] }
 0x1c6   : > { %v832_v60 = vadd.f32 %v831_v45, %v830_v49  ;;  %v740_v61 = vadd.f32 %v739_v46, %v738_v36  ;;  %v920_v20 = vadd.f32 %v919_v42, %v918_v34  ;;  %v828_v3 = vadd.f32 %v827_v43, %v826_v35 }
 0x1c7   : > { %v923_v9 = vrot.slane %v922_v52, 2  ;;  %v905_v50 = vrot.slane %v904_v53, 2  ;;  %v835_v62 = vrot.slane %v797_v57, 4  ;;  %v1013_v63 = vrot.slane %v1000_v58, 4 }
 0x1c8   : > { %v833_v6 = vrot.slane %v832_v60, 1  ;;  %v741_v7 = vrot.slane %v740_v61, 1  ;;  %v970_v8 = vpop.permute.xlu1 %969  ;;  %v874_v10 = vpop.permute.xlu0 %873  ;;  %v953_v26 = vadd.f32 %v920_v20, %v2440_v12  ;;  %v2467_v32 = vadd.f32 %v828_v3, %v2435_v4 }
 0x1c9   : > { %v924_v11 = vadd.f32 %v923_v9, %v922_v52  ;;  %v906_v28 = vadd.f32 %v905_v50, %v904_v53  ;;  %v836_v13 = vadd.f32 %v835_v62, %v797_v57  ;;  %v1014_v14 = vadd.f32 %v1013_v63, %v1000_v58  ;;  %v995_v62 = vld [vmem:[%s2344_s7 + $0xe8] sm:$0xff] }
 0x1ca   : > { %v834_v16 = vadd.f32 %v833_v6, %v832_v60  ;;  %v1001_v17 = vmul.f32 %v993_v0, %v970_v8  ;;  %v899_v54 = vmul.f32 %v891_v2, %v874_v10  ;;  %v2469_v33 = vadd.f32 %v741_v7, %v740_v61 }
 0x1cb   : > { %v925_v21 = vrot.slane %v924_v11, 1  ;;  %v907_v23 = vrot.slane %v906_v28, 1  ;;  %v837_v24 = vrot.slane %v836_v13, 2  ;;  %v1015_v22 = vrot.slane %v1014_v14, 2 }
 0x1cc   : > { %v1019_v27 = vrot.slane %v1001_v17, 4  ;;  %v927_v30 = vrot.slane %v899_v54, 4  ;;  %v878_v31 = vpop.permute.xlu1 %877  ;;  %v782_v5 = vpop.permute.xlu0 %781  ;;  %v2476_v42 = vadd.f32 %v834_v16, %v2445_v56 }
 0x1cd   : > { %v926_v34 = vadd.f32 %v925_v21, %v924_v11  ;;  %v1016_v35 = vadd.f32 %v1015_v22, %v1014_v14  ;;  %v2471_v49 = vpop.f32.mrb[0].mxu0  ;;  %v900_v37 = vmul.f32 %v892_v47, %v878_v31  ;;  %v798_v19 = vmul.f32 %v790_v29, %v782_v5 }
 0x1ce   : > { %v1020_v36 = vadd.f32 %v1019_v27, %v1001_v17  ;;  %v928_v44 = vadd.f32 %v927_v30, %v899_v54  ;;  %v1397_v12 = vpop.f32.mrb[1].mxu0  ;;  %v908_v43 = vadd.f32 %v907_v23, %v906_v28  ;;  %v838_v45 = vadd.f32 %v837_v24, %v836_v13  ;;  %v893_v23 = vld [vmem:[%s2344_s7 + $0x140] sm:$0xff] }
 0x1cf   : > { %v1017_v4 = vrot.slane %v1016_v35, 1  ;;  %v933_v51 = vrot.slane %v900_v37, 4  ;;  %v841_v52 = vrot.slane %v798_v19, 4  ;;  %v2479_v58 = vadd.f32 %v926_v34, %v2452_v38 }
 0x1d0   : > { %v1021_v46 = vrot.slane %v1020_v36, 2  ;;  %v929_v48 = vrot.slane %v928_v44, 2  ;;  %v974_v53 = vpop.permute.xlu1 %973  ;;  %v962_v57 = vpop.permute.xlu0 %961  ;;  %v839_v63 = vrot.slane %v838_v45, 1  ;;  %v951_v24 = vadd.f32 %v908_v43, %v2455_v39  ;;  %v894_v43 = vld [vmem:[%s2344_s7 + $0x170] sm:$0xff] }
 0x1d1   : > { %v1018_v59 = vadd.f32 %v1017_v4, %v1016_v35  ;;  %v1002_v1 = vmul.f32 %v994_v40, %v974_v53  ;;  %v999_v60 = vmul.f32 %v991_v41, %v962_v57  ;;  %v934_v56 = vadd.f32 %v933_v51, %v900_v37  ;;  %v997_v51 = vld [vmem:[%s2344_s7 + $0x148] sm:$0xff] }
 0x1d2   : > { %v1022_v61 = vadd.f32 %v1021_v46, %v1020_v36  ;;  %v930_v9 = vadd.f32 %v929_v48, %v928_v44  ;;  %v842_v50 = vadd.f32 %v841_v52, %v798_v19  ;;  %v2488_v27 = vadd.f32 %v839_v63, %v838_v45  ;;  %v998_v48 = vld [vmem:[%s2344_s7 + $0x178] sm:$0xff] }
 0x1d3   : > { %v1056_v0 = vadd.f32 %v1018_v59, %v952_v25  ;;  %v1025_v2 = vrot.slane %v1002_v1, 4  ;;  %v1007_v20 = vrot.slane %v999_v60, 4  ;;  %v935_v7 = vrot.slane %v934_v56, 2  ;;  %v996_v25 = vld [vmem:[%s2344_s7 + $0x118] sm:$0xff] }
 0x1d4   : > { %v1023_v3 = vrot.slane %v1022_v61, 1  ;;  %v931_v6 = vrot.slane %v930_v9, 1  ;;  %v843_v8 = vrot.slane %v842_v50, 2  ;;  %v978_v38 = vpop.permute.xlu1 %977  ;;  %v882_v10 = vpop.permute.xlu0 %881 }
 0x1d5   : > { %v2483_v11 = vmul.f32 %v2411_v55, %v1056_v0  ;;  %v1026_v28 = vadd.f32 %v1025_v2, %v1002_v1  ;;  %v1008_v13 = vadd.f32 %v1007_v20, %v999_v60  ;;  %v1003_v14 = vmul.f32 %v995_v62, %v978_v38 }
 0x1d6   : > { %v1024_v16 = vadd.f32 %v1023_v3, %v1022_v61  ;;  %v932_v17 = vadd.f32 %v931_v6, %v930_v9  ;;  %v936_v54 = vadd.f32 %v935_v7, %v934_v56  ;;  %v844_v21 = vadd.f32 %v843_v8, %v842_v50 }
 0x1d7   : > { %v1027_v22 = vrot.slane %v1026_v28, 2  ;;  %v1009_v47 = vrot.slane %v1008_v13, 2  ;;  %v1031_v29 = vrot.slane %v1003_v14, 4  ;;  %v901_v19 = vmul.f32 %v893_v23, %v882_v10 }
 0x1d8   : > { %v1057_v30 = vadd.f32 %v1024_v16, %v953_v26  ;;  %v937_v31 = vrot.slane %v936_v54, 1  ;;  %v845_v5 = vrot.slane %v844_v21, 1  ;;  %v982_v34 = vpop.permute.xlu1 %981  ;;  %v886_v35 = vpop.permute.xlu0 %885  ;;  %v1085_v39 = vrot.slane %v2483_v11, 7 }
 0x1d9   : > { %v1028_v36 = vadd.f32 %v1027_v22, %v1026_v28  ;;  %v1010_v44 = vadd.f32 %v1009_v47, %v1008_v13  ;;  %v1032_v37 = vadd.f32 %v1031_v29, %v1003_v14  ;;  %v955_v41 = vadd.f32 %v932_v17, %v2467_v32 }
 0x1da   : > { %v1071_v40 = vmul.f32 %v2411_v55, %v1057_v30  ;;  %v1004_v12 = vmul.f32 %v996_v25, %v982_v34  ;;  %v939_v46 = vrot.slane %v901_v19, 4  ;;  %v938_v53 = vadd.f32 %v937_v31, %v936_v54 }
 0x1db   : > { %v1029_v26 = vrot.slane %v1028_v36, 1  ;;  %v1011_v45 = vrot.slane %v1010_v44, 1  ;;  %v1033_v4 = vrot.slane %v1032_v37, 2  ;;  %v846_v57 = vadd.f32 %v845_v5, %v844_v21 }
 0x1dc   : > { %v1088_v52 = vrot.slane %v1071_v40, 6  ;;  %v1037_v59 = vrot.slane %v1004_v12, 4  ;;  %v990_v1 = vpop.permute.xlu1 %989  ;;  %v986_v60 = vpop.permute.xlu0 %985  ;;  %v940_v32 = vadd.f32 %v939_v46, %v901_v19  ;;  %v902_v62 = vmul.f32 %v894_v43, %v886_v35 }
 0x1dd   : > { %v1030_v61 = vadd.f32 %v1029_v26, %v1028_v36  ;;  %v1012_v9 = vadd.f32 %v1011_v45, %v1010_v44  ;;  %v1034_v56 = vadd.f32 %v1033_v4, %v1032_v37  ;;  %v1006_v63 = vmul.f32 %v998_v48, %v990_v1 }
 0x1de   : > { %v1038_v50 = vadd.f32 %v1037_v59, %v1004_v12  ;;  %v1005_v0 = vmul.f32 %v997_v51, %v986_v60  ;;  %v941_v6 = vrot.slane %v940_v32, 2  ;;  %v945_v8 = vrot.slane %v902_v62, 4 }
 0x1df   : > { %v1058_v2 = vadd.f32 %v1030_v61, %v2479_v58  ;;  %v1055_v20 = vadd.f32 %v1012_v9, %v951_v24  ;;  %v1035_v3 = vrot.slane %v1034_v56, 1  ;;  %v1049_v38 = vrot.slane %v1006_v63, 4 }
 0x1e0   : > { %v1039_v7 = vrot.slane %v1038_v50, 2  ;;  %v1043_v10 = vrot.slane %v1005_v0, 4  ;;  %v942_v14 = vadd.f32 %v941_v6, %v940_v32  ;;  %v946_v17 = vadd.f32 %v945_v8, %v902_v62 }
 0x1e1   : > { %v1072_v11 = vmul.f32 %v2411_v55, %v1058_v2  ;;  %v1069_v28 = vmul.f32 %v2411_v55, %v1055_v20  ;;  %v1036_v13 = vadd.f32 %v1035_v3, %v1034_v56  ;;  %v1050_v54 = vadd.f32 %v1049_v38, %v1006_v63 }
 0x1e2   : > { %v1040_v16 = vadd.f32 %v1039_v7, %v1038_v50  ;;  %v1044_v21 = vadd.f32 %v1043_v10, %v1005_v0  ;;  %v943_v58 = vrot.slane %v942_v14, 1  ;;  %v947_v29 = vrot.slane %v946_v17, 2 }
 0x1e3   : > { %v1091_v23 = vrot.slane %v1072_v11, 5  ;;  %v1059_v22 = vadd.f32 %v1036_v13, %v955_v41  ;;  %v1087_v24 = vsel %vm1086_vm6, %v1085_v39, %v1069_v28  ;;  %v1051_v25 = vrot.slane %v1050_v54, 2 }
 0x1e4   : > { %v1041_v47 = vrot.slane %v1040_v16, 1  ;;  %v1045_v30 = vrot.slane %v1044_v21, 2  ;;  %v956_v31 = vadd.f32 %v938_v53, %v2476_v42  ;;  %v944_v34 = vadd.f32 %v943_v58, %v942_v14 }
 0x1e5   : > { %v1073_v5 = vmul.f32 %v2411_v55, %v1059_v22  ;;  %v1090_v35 = vsel %vm1089_vm7, %v1088_v52, %v1087_v24  ;;  %v948_v44 = vadd.f32 %v947_v29, %v946_v17  ;;  %v1052_v37 = vadd.f32 %v1051_v25, %v1050_v54 }
 0x1e6   : > { %v1042_v36 = vadd.f32 %v1041_v47, %v1040_v16  ;;  %v1046_v19 = vadd.f32 %v1045_v30, %v1044_v21  ;;  %v750_v40 = vadd.f32 %v2469_v33, %v2447_v18  ;;  %v853_v39 = vadd.f32 %v2488_v27, %v2460_v15 }
 0x1e7   : > { %v1094_v41 = vrot.slane %v1073_v5, 4  ;;  %v1093_v42 = vsel %vm1092_vm8, %v1091_v23, %v1090_v35  ;;  %v949_v43 = vrot.slane %v948_v44, 1  ;;  %v1053_v26 = vrot.slane %v1052_v37, 1 }
 0x1e8   : > { %v1060_v12 = vadd.f32 %v1042_v36, %v956_v31  ;;  %v1047_v45 = vrot.slane %v1046_v19, 1  ;;  %v854_v4 = vadd.f32 %v846_v57, %v750_v40  ;;  %v957_v46 = vadd.f32 %v944_v34, %v853_v39 }
 0x1e9   : > { %v1096_v48 = vsel %vm1095_vm9, %v1094_v41, %v1093_v42  ;;  %v950_v52 = vadd.f32 %v949_v43, %v948_v44  ;;  %v1054_v18 = vadd.f32 %v1053_v26, %v1052_v37 }
 0x1ea   : > { %v1074_v51 = vmul.f32 %v2411_v55, %v1060_v12  ;;  %v1048_v33 = vadd.f32 %v1047_v45, %v1046_v19 }
 0x1eb   : > { %v958_v15 = vadd.f32 %v950_v52, %v854_v4 }
 0x1ec   : > { %v1061_v27 = vadd.f32 %v1048_v33, %v957_v46  ;;  %v1097_v53 = vrot.slane %v1074_v51, 3 }
 0x1ed   : > { %v1062_v59 = vadd.f32 %v1054_v18, %v958_v15 }
 0x1ee   : > { %v1075_v1 = vmul.f32 %v2411_v55, %v1061_v27  ;;  %v1099_v61 = vsel %vm1098_vm10, %v1097_v53, %v1096_v48 }
 0x1ef   : > { %v1076_v57 = vmul.f32 %v2411_v55, %v1062_v59 }
 0x1f0   : > { %v1100_v60 = vrot.slane %v1075_v1, 2 }
 0x1f1   : > { %v1103_v56 = vrot.slane %v1076_v57, 1 }
 0x1f2   : > { %v1102_v9 = vsel %vm1101_vm11, %v1100_v60, %v1099_v61 }
 0x1f3   : > { %v1105_v32 = vsel %vm1104_vm12, %v1103_v56, %v1102_v9 }
 0x1f4   : > { %v1178_v50 = vadd.f32 %v2471_v49, %v1105_v32 }
 0x1f6   : > { %1181 = vst [vmem:[%s379_s24] sm:$0xff] %v1178_v50 }
 0x1f7   : > { %1740 = shalt.err (!%p1737_p9)
}
 0x1f8   : > { %s1741_s9 = scalar_lea.hbm %s2519_s22, 128  ;;  %s1745_s2 = scalar_lea.hbm %s2690_s14, 1152 }
 0x1f9   : > { %p1742_p7 = scmp.ne.s32.totalorder %s2519_s22, %s1741_s9  ;;  %p1746_p8 = scmp.lt.u32.totalorder %s2519_s22, %s2690_s14 }
 0x1fa   : > { %p1747_p2 = scmp.lt.u32.totalorder %s1745_s2, %s1741_s9  ;;  %p1749_p11 = scmp.lt.u32.totalorder %s1741_s9, %s2519_s22 }
 0x1fb   : > { %p1743_p13 = pnand %p1742_p7, %p2691_p1 }
 0x1fc   : > { %p1748_p6 = por %p1747_p2, %p1746_p8 }
 0x1fd   : > { %p1744_p4 = pneg %p1743_p13 }
 0x1fe   : > { %p1750_p12 = por %p1749_p11, %p1748_p6 }
 0x200   : > { %p1751_p0 = pnand %p1750_p12, %p1744_p4 }
 0x202   : > { %1754 = shalt.err (!%p1751_p0)
}
 0x203   : > { %1425 = dma.vmem_to_hbm [thread:$0]  (%p2691_p1), %s2521_s18, 128, %s2519_s22, %s1183_s15  }
 0x204 PF: > { %s2692_s17 = sld [smem:[#allocation18_spill]]  ;;  %s2693_s13 = sld [smem:[#allocation27_spill]] }
 0x205   : > { %p1451_p5 = scmp.ge.s32.totalorder %s1889_s6, 2 }
 0x20a   : > { %s1210_s24 = sand.u32 1, %s2692_s17   ;;  %p2694_p10 = scmp.ne.s32.totalorder %s2693_s13, 0 }
 0x20b   : > { %s1211_s27 = scalar_lea.sflag [#allocation4], %s1210_s24 }
 0x20c   : > { %p1445_p3 = pnand %p1451_p5, %p2694_p10 }
 0x20e   : > { %1832 = dma.done.wait (!%p1445_p3), %s1211_s27, 128  }
 0x20f   : > { %1834 = vsyncadd (!%p1445_p3), %s1211_s27, 4294967168  ;;  %s27_s6 = sadd.s32 1, %s1889_s6   ;;  %s2696_s18 = sld [smem:[#allocation19_spill]] }
 0x210   : > { %p2550_p9 = scmp.ge.s32.totalorder %s27_s6, 11   ;;  %s2697_s21 = sld [smem:[#allocation20_spill]] }
 0x211   : > { %s2698_s22 = sld [smem:[#allocation21_spill]]  ;;  %s2699_s23 = sld [smem:[#allocation30_spill]] }
 0x212   : > { %s2700_s15 = sld [smem:[#allocation28_spill]]  ;;  %s2701_s11 = smov %s2716_s28 }
 0x213   : > { %s2702_s19 = smov %s1845_s20  ;;  %s2703_s20 = smov %s2190_s3 }
 0x214   : > { %s2704_s24 = smov %s1865_s25  ;;  %s2705_s25 = smov %s1869_s26 }
 0x215   : > { %s2706_s26 = smov %s2187_s16  ;;  %s2707_s27 = smov %s1881_s29 }
 0x216   : > { %s2708_s28 = smov %s1885_s30  ;;  %s2710_s30 = smov %s2701_s11 }
 0x217   :  { %26 = sbr.rel (!%p2550_p9) target bundleno = 19 (0x13), region = 126 }
 0x218   : > { %s2709_s29 = smov %s2700_s15 }
 0x21e   :  { %1216 = vsyncpa [#allocation3], 1 }
 0x21f   :  { %1218 = vsyncpa [#allocation3 + $0x1], 1 }
 0x220   :  { %1219 = vsyncpa [#allocation6], 1 }
 0x221   :  { %1221 = vsyncpa [#allocation6 + $0x1], 1 }
 0x222   :  { %1222 = vsyncpa [#allocation9], 1 }
 0x223   :  { %1224 = vsyncpa [#allocation9 + $0x1], 1 }
 0x224   :  { %1225 = vsyncpa [#allocation4], 1 }
 0x225   :  { %1227 = vsyncpa [#allocation4 + $0x1], 1 }

</bundles_post_ra>
